<compile_context>
chip_gen: v6e
topology: v6e:2x2x1
jax: 0.10.0
libtpu: 0.0.40
codegen_flags: <defaults>
</compile_context>

<pallas_src>
import jax
import jax.numpy as jnp
from jax import lax
from jax.experimental import pallas as pl
from jax.experimental.pallas import tpu as pltpu

K = 5  # conv kernel size (nn.Conv2d(1, 1, 5))

_VMEM_INPUT_BLOCK_BUDGET = 6 << 20  # bytes per input block (Pallas double-buffers it)


def _make_conv_pool_kernel(HP, WP, bt):
    """Builds the kernel for one batch-tile group.

    Ref shapes seen by the kernel (leading group dim squeezed away):
      w_ref  : (25,)                 SMEM  flat conv weights
      b_ref  : (1,)                  SMEM  conv bias
      xp_ref : (4, HP+2, (WP+2)*bt)  VMEM  phase planes, lane index = v*bt + n:
                                           xp[2a+b, u, v*bt+n] = x[n, 2u+a, 2v+b]
      o_ref  : (HP, WP*bt)           VMEM  pooled output, lane index = v*bt + n
    """
    WL = WP * bt

    def kernel(w_ref, b_ref, xp_ref, o_ref):
        # Hoist all 25 scalar weight reads out of the pooling-phase loops.
        w = [w_ref[i] for i in range(K * K)]

        pooled = None
        # Four pooling offsets (dh, dw): each accumulator is one stride-2
        # lattice of the valid cross-correlation (PyTorch Conv2d semantics).
        # Bias is excluded here (max commutes with a constant shift) and added
        # once before the store.
        for dh in range(2):
            for dw in range(2):
                acc = None
                for ki in range(K):
                    for kj in range(K):
                        sh, sw = dh + ki, dw + kj
                        ph = 2 * (sh & 1) + (sw & 1)
                        # Static Ref slice per tap: no whole-block vreg
                        # materialization, loads happen per use.
                        tap = xp_ref[ph,
                                     (sh >> 1):(sh >> 1) + HP,
                                     (sw >> 1) * bt:(sw >> 1) * bt + WL]
                        # f32 weight promotes the tap in the multiply -> f32
                        # accumulation without a block-wide upcast.
                        term = w[ki * K + kj] * tap
                        acc = term if acc is None else acc + term
                pooled = acc if pooled is None else jnp.maximum(pooled, acc)

        o_ref[...] = (pooled + b_ref[0]).astype(o_ref.dtype)

    return kernel


def net_forward(x, weight, bias):
    """x: (N, 1, H, W); weight: (1, 1, K, K); bias: (1,). Returns (N, 1, HP, WP)."""
    N, C, H, W = x.shape
    assert C == 1, "Net uses Conv2d(1, 1, 5): single input channel"
    HC, WC = H - K + 1, W - K + 1            # valid conv output
    assert HC >= 2 and WC >= 2, "input too small for 5x5 conv followed by 2x2 pool"
    HP, WP = HC // 2, WC // 2                # floor-mode 2x2 / stride-2 pool output
    HPH, WPH = HP + 2, WP + 2                # phase-plane extent covering all taps

    # ---- batch (lane) tile: biggest tile that fits the VMEM budget ----------
    itemsize = jnp.dtype(x.dtype).itemsize
    per_image = 4 * HPH * WPH * itemsize
    max_bt = max(1, _VMEM_INPUT_BLOCK_BUDGET // per_image)
    if N <= 128:
        bt = min(N, max_bt)                  # small-batch inference: no batch padding
    else:
        # Multiple of 128 so every lane slice / store is 128-aligned + unmasked.
        bt = max(128, min(512, (max_bt // 128) * 128))
        # TODO(synk): for very large images (per_image * 128 >> budget) add a
        # spatial (HP) grid axis instead of relying on one 128-wide batch tile.
    G = -(-N // bt)                          # number of batch-tile groups
    N_pad = G * bt

    # ---- single-pass relayout: pixel-unshuffle into even/odd phase planes ---
    #   xp[g, 2a+b, u, v*bt + n] = x[g*bt + n, 2u + a, 2v + b]
    x3 = x.reshape(N, H, W)
    if N_pad != N:
        x3 = jnp.pad(x3, ((0, N_pad - N), (0, 0), (0, 0)))
    x3 = x3[:, :2 * HPH, :2 * WPH]                     # crop to phase extent
    xp = x3.reshape(G, bt, HPH, 2, WPH, 2)
    xp = jnp.transpose(xp, (0, 3, 5, 2, 4, 1))         # (G, a, b, u, v, n)
    xp = xp.reshape(G, 4, HPH, WPH * bt)               # lane = v*bt + n

    w_flat = weight.reshape(K * K).astype(jnp.float32)
    b1 = bias.reshape(1).astype(jnp.float32)

    out = pl.pallas_call(
        _make_conv_pool_kernel(HP, WP, bt),
        out_shape=jax.ShapeDtypeStruct((G, HP, WP * bt), x.dtype),
        grid=(G,),
        in_specs=[
            pl.BlockSpec(memory_space=pltpu.MemorySpace.SMEM),   # (25,) weights
            pl.BlockSpec(memory_space=pltpu.MemorySpace.SMEM),   # (1,)  bias
            pl.BlockSpec((pl.Squeezed(), 4, HPH, WPH * bt),
                         lambda g: (g, 0, 0, 0)),
        ],
        out_specs=pl.BlockSpec((pl.Squeezed(), HP, WP * bt),
                               lambda g: (g, 0, 0)),
        # TODO(synk): on v7x (2 TensorCores) add a second parallel grid axis over
        # output rows so small-batch (G == 1) calls use both cores; gate on
        # pltpu.get_tpu_info(). No effect on v5e/v6e (1 TC).
        compiler_params=pltpu.CompilerParams(
            dimension_semantics=("parallel",)),
    )(w_flat, b1, xp)

    # ---- back to NCHW --------------------------------------------------------
    out = out.reshape(G, HP, WP, bt)
    out = jnp.transpose(out, (0, 3, 1, 2)).reshape(N_pad, HP, WP)[:N]
    return out.reshape(N, 1, HP, WP)


if __name__ == "__main__":
    key = jax.random.PRNGKey(0)
    kx, kw, kb = jax.random.split(key, 3)

    # small shapes consistent with the module: batch=2, 1 channel, 16x16 spatial
    N, C, H, W = 2, 1, 16, 16
    x = jax.random.normal(kx, (N, C, H, W), dtype=jnp.float32)
    # synthetic Conv2d(1,1,5) parameters: weight (1,1,5,5), bias (1,)
    weight = jax.random.normal(kw, (1, 1, K, K), dtype=jnp.float32) * 0.2
    bias = jax.random.normal(kb, (1,), dtype=jnp.float32) * 0.1

    out = jax.block_until_ready(net_forward(x, weight, bias))

    # pure-JAX reference for correctness
    conv = lax.conv_general_dilated(
        x, weight, window_strides=(1, 1), padding="VALID",
        dimension_numbers=("NCHW", "OIHW", "NCHW")) + bias.reshape(1, 1, 1, 1)
    ref = lax.reduce_window(
        conv, -jnp.inf, lax.max,
        window_dimensions=(1, 1, 2, 2),
        window_strides=(1, 1, 2, 2), padding="VALID")

    assert out.shape == ref.shape == (N, 1, (H - K + 1) // 2, (W - K + 1) // 2)
    assert jnp.allclose(out, ref, atol=1e-4, rtol=1e-4)
    print("KERNEL_OK")
</pallas_src>

<mosaic_0001>
module attributes {stable_mosaic.version = 11 : i64} {
  func.func @kernel(%arg0: i32, %arg1: memref<25xf32, #tpu.memory_space<smem>>, %arg2: memref<1xf32, #tpu.memory_space<smem>>, %arg3: memref<1x4x8x16xf32, #tpu.memory_space<vmem>>, %arg4: memref<1x6x12xf32, #tpu.memory_space<vmem>>) attributes {dimension_semantics = [#tpu.dimension_semantics<parallel>], iteration_bounds = array<i64: 1>, scalar_prefetch = 0 : i64, scratch_operands = 0 : i64, tpu.core_type = #tpu.core_type<tc>, window_params = [{transform_indices = @transform_0, window_bounds = array<i64: 25>}, {transform_indices = @transform_1, window_bounds = array<i64: 1>}, {transform_indices = @transform_2, window_bounds = array<i64: 1, 4, 8, 16>}, {transform_indices = @transform_3, window_bounds = array<i64: 1, 6, 12>}]} {
    %c0 = arith.constant 0 : index
    %0 = memref.load %arg1[%c0] : memref<25xf32, #tpu.memory_space<smem>>
    %c1 = arith.constant 1 : index
    %1 = memref.load %arg1[%c1] : memref<25xf32, #tpu.memory_space<smem>>
    %c2 = arith.constant 2 : index
    %2 = memref.load %arg1[%c2] : memref<25xf32, #tpu.memory_space<smem>>
    %c3 = arith.constant 3 : index
    %3 = memref.load %arg1[%c3] : memref<25xf32, #tpu.memory_space<smem>>
    %c4 = arith.constant 4 : index
    %4 = memref.load %arg1[%c4] : memref<25xf32, #tpu.memory_space<smem>>
    %c5 = arith.constant 5 : index
    %5 = memref.load %arg1[%c5] : memref<25xf32, #tpu.memory_space<smem>>
    %c6 = arith.constant 6 : index
    %6 = memref.load %arg1[%c6] : memref<25xf32, #tpu.memory_space<smem>>
    %c7 = arith.constant 7 : index
    %7 = memref.load %arg1[%c7] : memref<25xf32, #tpu.memory_space<smem>>
    %c8 = arith.constant 8 : index
    %8 = memref.load %arg1[%c8] : memref<25xf32, #tpu.memory_space<smem>>
    %c9 = arith.constant 9 : index
    %9 = memref.load %arg1[%c9] : memref<25xf32, #tpu.memory_space<smem>>
    %c10 = arith.constant 10 : index
    %10 = memref.load %arg1[%c10] : memref<25xf32, #tpu.memory_space<smem>>
    %c11 = arith.constant 11 : index
    %11 = memref.load %arg1[%c11] : memref<25xf32, #tpu.memory_space<smem>>
    %c12 = arith.constant 12 : index
    %12 = memref.load %arg1[%c12] : memref<25xf32, #tpu.memory_space<smem>>
    %c13 = arith.constant 13 : index
    %13 = memref.load %arg1[%c13] : memref<25xf32, #tpu.memory_space<smem>>
    %c14 = arith.constant 14 : index
    %14 = memref.load %arg1[%c14] : memref<25xf32, #tpu.memory_space<smem>>
    %c15 = arith.constant 15 : index
    %15 = memref.load %arg1[%c15] : memref<25xf32, #tpu.memory_space<smem>>
    %c16 = arith.constant 16 : index
    %16 = memref.load %arg1[%c16] : memref<25xf32, #tpu.memory_space<smem>>
    %c17 = arith.constant 17 : index
    %17 = memref.load %arg1[%c17] : memref<25xf32, #tpu.memory_space<smem>>
    %c18 = arith.constant 18 : index
    %18 = memref.load %arg1[%c18] : memref<25xf32, #tpu.memory_space<smem>>
    %c19 = arith.constant 19 : index
    %19 = memref.load %arg1[%c19] : memref<25xf32, #tpu.memory_space<smem>>
    %c20 = arith.constant 20 : index
    %20 = memref.load %arg1[%c20] : memref<25xf32, #tpu.memory_space<smem>>
    %c21 = arith.constant 21 : index
    %21 = memref.load %arg1[%c21] : memref<25xf32, #tpu.memory_space<smem>>
    %c22 = arith.constant 22 : index
    %22 = memref.load %arg1[%c22] : memref<25xf32, #tpu.memory_space<smem>>
    %c23 = arith.constant 23 : index
    %23 = memref.load %arg1[%c23] : memref<25xf32, #tpu.memory_space<smem>>
    %c24 = arith.constant 24 : index
    %24 = memref.load %arg1[%c24] : memref<25xf32, #tpu.memory_space<smem>>
    %c0_0 = arith.constant 0 : index
    %c0_1 = arith.constant 0 : index
    %c0_2 = arith.constant 0 : index
    %c0_3 = arith.constant 0 : index
    %25 = vector.load %arg3[%c0_0, %c0_1, %c0_2, %c0_3] : memref<1x4x8x16xf32, #tpu.memory_space<vmem>>, vector<1x1x6x12xf32>
    %26 = vector.shape_cast %25 : vector<1x1x6x12xf32> to vector<6x12xf32>
    %27 = vector.broadcast %0 : f32 to vector<6x12xf32>
    %28 = arith.mulf %27, %26 : vector<6x12xf32>
    %c0_4 = arith.constant 0 : index
    %c1_5 = arith.constant 1 : index
    %c0_6 = arith.constant 0 : index
    %c0_7 = arith.constant 0 : index
    %29 = vector.load %arg3[%c0_4, %c1_5, %c0_6, %c0_7] : memref<1x4x8x16xf32, #tpu.memory_space<vmem>>, vector<1x1x6x12xf32>
    %30 = vector.shape_cast %29 : vector<1x1x6x12xf32> to vector<6x12xf32>
    %31 = vector.broadcast %1 : f32 to vector<6x12xf32>
    %32 = arith.mulf %31, %30 : vector<6x12xf32>
    %33 = arith.addf %28, %32 : vector<6x12xf32>
    %c0_8 = arith.constant 0 : index
    %c0_9 = arith.constant 0 : index
    %c0_10 = arith.constant 0 : index
    %c2_11 = arith.constant 2 : index
    %34 = vector.load %arg3[%c0_8, %c0_9, %c0_10, %c2_11] : memref<1x4x8x16xf32, #tpu.memory_space<vmem>>, vector<1x1x6x12xf32>
    %35 = vector.shape_cast %34 : vector<1x1x6x12xf32> to vector<6x12xf32>
    %36 = vector.broadcast %2 : f32 to vector<6x12xf32>
    %37 = arith.mulf %36, %35 : vector<6x12xf32>
    %38 = arith.addf %33, %37 : vector<6x12xf32>
    %c0_12 = arith.constant 0 : index
    %c1_13 = arith.constant 1 : index
    %c0_14 = arith.constant 0 : index
    %c2_15 = arith.constant 2 : index
    %39 = vector.load %arg3[%c0_12, %c1_13, %c0_14, %c2_15] : memref<1x4x8x16xf32, #tpu.memory_space<vmem>>, vector<1x1x6x12xf32>
    %40 = vector.shape_cast %39 : vector<1x1x6x12xf32> to vector<6x12xf32>
    %41 = vector.broadcast %3 : f32 to vector<6x12xf32>
    %42 = arith.mulf %41, %40 : vector<6x12xf32>
    %43 = arith.addf %38, %42 : vector<6x12xf32>
    %c0_16 = arith.constant 0 : index
    %c0_17 = arith.constant 0 : index
    %c0_18 = arith.constant 0 : index
    %c4_19 = arith.constant 4 : index
    %44 = vector.load %arg3[%c0_16, %c0_17, %c0_18, %c4_19] : memref<1x4x8x16xf32, #tpu.memory_space<vmem>>, vector<1x1x6x12xf32>
    %45 = vector.shape_cast %44 : vector<1x1x6x12xf32> to vector<6x12xf32>
    %46 = vector.broadcast %4 : f32 to vector<6x12xf32>
    %47 = arith.mulf %46, %45 : vector<6x12xf32>
    %48 = arith.addf %43, %47 : vector<6x12xf32>
    %c0_20 = arith.constant 0 : index
    %c2_21 = arith.constant 2 : index
    %c0_22 = arith.constant 0 : index
    %c0_23 = arith.constant 0 : index
    %49 = vector.load %arg3[%c0_20, %c2_21, %c0_22, %c0_23] : memref<1x4x8x16xf32, #tpu.memory_space<vmem>>, vector<1x1x6x12xf32>
    %50 = vector.shape_cast %49 : vector<1x1x6x12xf32> to vector<6x12xf32>
    %51 = vector.broadcast %5 : f32 to vector<6x12xf32>
    %52 = arith.mulf %51, %50 : vector<6x12xf32>
    %53 = arith.addf %48, %52 : vector<6x12xf32>
    %c0_24 = arith.constant 0 : index
    %c3_25 = arith.constant 3 : index
    %c0_26 = arith.constant 0 : index
    %c0_27 = arith.constant 0 : index
    %54 = vector.load %arg3[%c0_24, %c3_25, %c0_26, %c0_27] : memref<1x4x8x16xf32, #tpu.memory_space<vmem>>, vector<1x1x6x12xf32>
    %55 = vector.shape_cast %54 : vector<1x1x6x12xf32> to vector<6x12xf32>
    %56 = vector.broadcast %6 : f32 to vector<6x12xf32>
    %57 = arith.mulf %56, %55 : vector<6x12xf32>
    %58 = arith.addf %53, %57 : vector<6x12xf32>
    %c0_28 = arith.constant 0 : index
    %c2_29 = arith.constant 2 : index
    %c0_30 = arith.constant 0 : index
    %c2_31 = arith.constant 2 : index
    %59 = vector.load %arg3[%c0_28, %c2_29, %c0_30, %c2_31] : memref<1x4x8x16xf32, #tpu.memory_space<vmem>>, vector<1x1x6x12xf32>
    %60 = vector.shape_cast %59 : vector<1x1x6x12xf32> to vector<6x12xf32>
    %61 = vector.broadcast %7 : f32 to vector<6x12xf32>
    %62 = arith.mulf %61, %60 : vector<6x12xf32>
    %63 = arith.addf %58, %62 : vector<6x12xf32>
    %c0_32 = arith.constant 0 : index
    %c3_33 = arith.constant 3 : index
    %c0_34 = arith.constant 0 : index
    %c2_35 = arith.constant 2 : index
    %64 = vector.load %arg3[%c0_32, %c3_33, %c0_34, %c2_35] : memref<1x4x8x16xf32, #tpu.memory_space<vmem>>, vector<1x1x6x12xf32>
    %65 = vector.shape_cast %64 : vector<1x1x6x12xf32> to vector<6x12xf32>
    %66 = vector.broadcast %8 : f32 to vector<6x12xf32>
    %67 = arith.mulf %66, %65 : vector<6x12xf32>
    %68 = arith.addf %63, %67 : vector<6x12xf32>
    %c0_36 = arith.constant 0 : index
    %c2_37 = arith.constant 2 : index
    %c0_38 = arith.constant 0 : index
    %c4_39 = arith.constant 4 : index
    %69 = vector.load %arg3[%c0_36, %c2_37, %c0_38, %c4_39] : memref<1x4x8x16xf32, #tpu.memory_space<vmem>>, vector<1x1x6x12xf32>
    %70 = vector.shape_cast %69 : vector<1x1x6x12xf32> to vector<6x12xf32>
    %71 = vector.broadcast %9 : f32 to vector<6x12xf32>
    %72 = arith.mulf %71, %70 : vector<6x12xf32>
    %73 = arith.addf %68, %72 : vector<6x12xf32>
    %c0_40 = arith.constant 0 : index
    %c0_41 = arith.constant 0 : index
    %c1_42 = arith.constant 1 : index
    %c0_43 = arith.constant 0 : index
    %74 = vector.load %arg3[%c0_40, %c0_41, %c1_42, %c0_43] : memref<1x4x8x16xf32, #tpu.memory_space<vmem>>, vector<1x1x6x12xf32>
    %75 = vector.shape_cast %74 : vector<1x1x6x12xf32> to vector<6x12xf32>
    %76 = vector.broadcast %10 : f32 to vector<6x12xf32>
    %77 = arith.mulf %76, %75 : vector<6x12xf32>
    %78 = arith.addf %73, %77 : vector<6x12xf32>
    %c0_44 = arith.constant 0 : index
    %c1_45 = arith.constant 1 : index
    %c1_46 = arith.constant 1 : index
    %c0_47 = arith.constant 0 : index
    %79 = vector.load %arg3[%c0_44, %c1_45, %c1_46, %c0_47] : memref<1x4x8x16xf32, #tpu.memory_space<vmem>>, vector<1x1x6x12xf32>
    %80 = vector.shape_cast %79 : vector<1x1x6x12xf32> to vector<6x12xf32>
    %81 = vector.broadcast %11 : f32 to vector<6x12xf32>
    %82 = arith.mulf %81, %80 : vector<6x12xf32>
    %83 = arith.addf %78, %82 : vector<6x12xf32>
    %c0_48 = arith.constant 0 : index
    %c0_49 = arith.constant 0 : index
    %c1_50 = arith.constant 1 : index
    %c2_51 = arith.constant 2 : index
    %84 = vector.load %arg3[%c0_48, %c0_49, %c1_50, %c2_51] : memref<1x4x8x16xf32, #tpu.memory_space<vmem>>, vector<1x1x6x12xf32>
    %85 = vector.shape_cast %84 : vector<1x1x6x12xf32> to vector<6x12xf32>
    %86 = vector.broadcast %12 : f32 to vector<6x12xf32>
    %87 = arith.mulf %86, %85 : vector<6x12xf32>
    %88 = arith.addf %83, %87 : vector<6x12xf32>
    %c0_52 = arith.constant 0 : index
    %c1_53 = arith.constant 1 : index
    %c1_54 = arith.constant 1 : index
    %c2_55 = arith.constant 2 : index
    %89 = vector.load %arg3[%c0_52, %c1_53, %c1_54, %c2_55] : memref<1x4x8x16xf32, #tpu.memory_space<vmem>>, vector<1x1x6x12xf32>
    %90 = vector.shape_cast %89 : vector<1x1x6x12xf32> to vector<6x12xf32>
    %91 = vector.broadcast %13 : f32 to vector<6x12xf32>
    %92 = arith.mulf %91, %90 : vector<6x12xf32>
    %93 = arith.addf %88, %92 : vector<6x12xf32>
    %c0_56 = arith.constant 0 : index
    %c0_57 = arith.constant 0 : index
    %c1_58 = arith.constant 1 : index
    %c4_59 = arith.constant 4 : index
    %94 = vector.load %arg3[%c0_56, %c0_57, %c1_58, %c4_59] : memref<1x4x8x16xf32, #tpu.memory_space<vmem>>, vector<1x1x6x12xf32>
    %95 = vector.shape_cast %94 : vector<1x1x6x12xf32> to vector<6x12xf32>
    %96 = vector.broadcast %14 : f32 to vector<6x12xf32>
    %97 = arith.mulf %96, %95 : vector<6x12xf32>
    %98 = arith.addf %93, %97 : vector<6x12xf32>
    %c0_60 = arith.constant 0 : index
    %c2_61 = arith.constant 2 : index
    %c1_62 = arith.constant 1 : index
    %c0_63 = arith.constant 0 : index
    %99 = vector.load %arg3[%c0_60, %c2_61, %c1_62, %c0_63] : memref<1x4x8x16xf32, #tpu.memory_space<vmem>>, vector<1x1x6x12xf32>
    %100 = vector.shape_cast %99 : vector<1x1x6x12xf32> to vector<6x12xf32>
    %101 = vector.broadcast %15 : f32 to vector<6x12xf32>
    %102 = arith.mulf %101, %100 : vector<6x12xf32>
    %103 = arith.addf %98, %102 : vector<6x12xf32>
    %c0_64 = arith.constant 0 : index
    %c3_65 = arith.constant 3 : index
    %c1_66 = arith.constant 1 : index
    %c0_67 = arith.constant 0 : index
    %104 = vector.load %arg3[%c0_64, %c3_65, %c1_66, %c0_67] : memref<1x4x8x16xf32, #tpu.memory_space<vmem>>, vector<1x1x6x12xf32>
    %105 = vector.shape_cast %104 : vector<1x1x6x12xf32> to vector<6x12xf32>
    %106 = vector.broadcast %16 : f32 to vector<6x12xf32>
    %107 = arith.mulf %106, %105 : vector<6x12xf32>
    %108 = arith.addf %103, %107 : vector<6x12xf32>
    %c0_68 = arith.constant 0 : index
    %c2_69 = arith.constant 2 : index
    %c1_70 = arith.constant 1 : index
    %c2_71 = arith.constant 2 : index
    %109 = vector.load %arg3[%c0_68, %c2_69, %c1_70, %c2_71] : memref<1x4x8x16xf32, #tpu.memory_space<vmem>>, vector<1x1x6x12xf32>
    %110 = vector.shape_cast %109 : vector<1x1x6x12xf32> to vector<6x12xf32>
    %111 = vector.broadcast %17 : f32 to vector<6x12xf32>
    %112 = arith.mulf %111, %110 : vector<6x12xf32>
    %113 = arith.addf %108, %112 : vector<6x12xf32>
    %c0_72 = arith.constant 0 : index
    %c3_73 = arith.constant 3 : index
    %c1_74 = arith.constant 1 : index
    %c2_75 = arith.constant 2 : index
    %114 = vector.load %arg3[%c0_72, %c3_73, %c1_74, %c2_75] : memref<1x4x8x16xf32, #tpu.memory_space<vmem>>, vector<1x1x6x12xf32>
    %115 = vector.shape_cast %114 : vector<1x1x6x12xf32> to vector<6x12xf32>
    %116 = vector.broadcast %18 : f32 to vector<6x12xf32>
    %117 = arith.mulf %116, %115 : vector<6x12xf32>
    %118 = arith.addf %113, %117 : vector<6x12xf32>
    %c0_76 = arith.constant 0 : index
    %c2_77 = arith.constant 2 : index
    %c1_78 = arith.constant 1 : index
    %c4_79 = arith.constant 4 : index
    %119 = vector.load %arg3[%c0_76, %c2_77, %c1_78, %c4_79] : memref<1x4x8x16xf32, #tpu.memory_space<vmem>>, vector<1x1x6x12xf32>
    %120 = vector.shape_cast %119 : vector<1x1x6x12xf32> to vector<6x12xf32>
    %121 = vector.broadcast %19 : f32 to vector<6x12xf32>
    %122 = arith.mulf %121, %120 : vector<6x12xf32>
    %123 = arith.addf %118, %122 : vector<6x12xf32>
    %c0_80 = arith.constant 0 : index
    %c0_81 = arith.constant 0 : index
    %c2_82 = arith.constant 2 : index
    %c0_83 = arith.constant 0 : index
    %124 = vector.load %arg3[%c0_80, %c0_81, %c2_82, %c0_83] : memref<1x4x8x16xf32, #tpu.memory_space<vmem>>, vector<1x1x6x12xf32>
    %125 = vector.shape_cast %124 : vector<1x1x6x12xf32> to vector<6x12xf32>
    %126 = vector.broadcast %20 : f32 to vector<6x12xf32>
    %127 = arith.mulf %126, %125 : vector<6x12xf32>
    %128 = arith.addf %123, %127 : vector<6x12xf32>
    %c0_84 = arith.constant 0 : index
    %c1_85 = arith.constant 1 : index
    %c2_86 = arith.constant 2 : index
    %c0_87 = arith.constant 0 : index
    %129 = vector.load %arg3[%c0_84, %c1_85, %c2_86, %c0_87] : memref<1x4x8x16xf32, #tpu.memory_space<vmem>>, vector<1x1x6x12xf32>
    %130 = vector.shape_cast %129 : vector<1x1x6x12xf32> to vector<6x12xf32>
    %131 = vector.broadcast %21 : f32 to vector<6x12xf32>
    %132 = arith.mulf %131, %130 : vector<6x12xf32>
    %133 = arith.addf %128, %132 : vector<6x12xf32>
    %c0_88 = arith.constant 0 : index
    %c0_89 = arith.constant 0 : index
    %c2_90 = arith.constant 2 : index
    %c2_91 = arith.constant 2 : index
    %134 = vector.load %arg3[%c0_88, %c0_89, %c2_90, %c2_91] : memref<1x4x8x16xf32, #tpu.memory_space<vmem>>, vector<1x1x6x12xf32>
    %135 = vector.shape_cast %134 : vector<1x1x6x12xf32> to vector<6x12xf32>
    %136 = vector.broadcast %22 : f32 to vector<6x12xf32>
    %137 = arith.mulf %136, %135 : vector<6x12xf32>
    %138 = arith.addf %133, %137 : vector<6x12xf32>
    %c0_92 = arith.constant 0 : index
    %c1_93 = arith.constant 1 : index
    %c2_94 = arith.constant 2 : index
    %c2_95 = arith.constant 2 : index
    %139 = vector.load %arg3[%c0_92, %c1_93, %c2_94, %c2_95] : memref<1x4x8x16xf32, #tpu.memory_space<vmem>>, vector<1x1x6x12xf32>
    %140 = vector.shape_cast %139 : vector<1x1x6x12xf32> to vector<6x12xf32>
    %141 = vector.broadcast %23 : f32 to vector<6x12xf32>
    %142 = arith.mulf %141, %140 : vector<6x12xf32>
    %143 = arith.addf %138, %142 : vector<6x12xf32>
    %c0_96 = arith.constant 0 : index
    %c0_97 = arith.constant 0 : index
    %c2_98 = arith.constant 2 : index
    %c4_99 = arith.constant 4 : index
    %144 = vector.load %arg3[%c0_96, %c0_97, %c2_98, %c4_99] : memref<1x4x8x16xf32, #tpu.memory_space<vmem>>, vector<1x1x6x12xf32>
    %145 = vector.shape_cast %144 : vector<1x1x6x12xf32> to vector<6x12xf32>
    %146 = vector.broadcast %24 : f32 to vector<6x12xf32>
    %147 = arith.mulf %146, %145 : vector<6x12xf32>
    %148 = arith.addf %143, %147 : vector<6x12xf32>
    %c0_100 = arith.constant 0 : index
    %c1_101 = arith.constant 1 : index
    %c0_102 = arith.constant 0 : index
    %c0_103 = arith.constant 0 : index
    %149 = vector.load %arg3[%c0_100, %c1_101, %c0_102, %c0_103] : memref<1x4x8x16xf32, #tpu.memory_space<vmem>>, vector<1x1x6x12xf32>
    %150 = vector.shape_cast %149 : vector<1x1x6x12xf32> to vector<6x12xf32>
    %151 = vector.broadcast %0 : f32 to vector<6x12xf32>
    %152 = arith.mulf %151, %150 : vector<6x12xf32>
    %c0_104 = arith.constant 0 : index
    %c0_105 = arith.constant 0 : index
    %c0_106 = arith.constant 0 : index
    %c2_107 = arith.constant 2 : index
    %153 = vector.load %arg3[%c0_104, %c0_105, %c0_106, %c2_107] : memref<1x4x8x16xf32, #tpu.memory_space<vmem>>, vector<1x1x6x12xf32>
    %154 = vector.shape_cast %153 : vector<1x1x6x12xf32> to vector<6x12xf32>
    %155 = vector.broadcast %1 : f32 to vector<6x12xf32>
    %156 = arith.mulf %155, %154 : vector<6x12xf32>
    %157 = arith.addf %152, %156 : vector<6x12xf32>
    %c0_108 = arith.constant 0 : index
    %c1_109 = arith.constant 1 : index
    %c0_110 = arith.constant 0 : index
    %c2_111 = arith.constant 2 : index
    %158 = vector.load %arg3[%c0_108, %c1_109, %c0_110, %c2_111] : memref<1x4x8x16xf32, #tpu.memory_space<vmem>>, vector<1x1x6x12xf32>
    %159 = vector.shape_cast %158 : vector<1x1x6x12xf32> to vector<6x12xf32>
    %160 = vector.broadcast %2 : f32 to vector<6x12xf32>
    %161 = arith.mulf %160, %159 : vector<6x12xf32>
    %162 = arith.addf %157, %161 : vector<6x12xf32>
    %c0_112 = arith.constant 0 : index
    %c0_113 = arith.constant 0 : index
    %c0_114 = arith.constant 0 : index
    %c4_115 = arith.constant 4 : index
    %163 = vector.load %arg3[%c0_112, %c0_113, %c0_114, %c4_115] : memref<1x4x8x16xf32, #tpu.memory_space<vmem>>, vector<1x1x6x12xf32>
    %164 = vector.shape_cast %163 : vector<1x1x6x12xf32> to vector<6x12xf32>
    %165 = vector.broadcast %3 : f32 to vector<6x12xf32>
    %166 = arith.mulf %165, %164 : vector<6x12xf32>
    %167 = arith.addf %162, %166 : vector<6x12xf32>
    %c0_116 = arith.constant 0 : index
    %c1_117 = arith.constant 1 : index
    %c0_118 = arith.constant 0 : index
    %c4_119 = arith.constant 4 : index
    %168 = vector.load %arg3[%c0_116, %c1_117, %c0_118, %c4_119] : memref<1x4x8x16xf32, #tpu.memory_space<vmem>>, vector<1x1x6x12xf32>
    %169 = vector.shape_cast %168 : vector<1x1x6x12xf32> to vector<6x12xf32>
    %170 = vector.broadcast %4 : f32 to vector<6x12xf32>
    %171 = arith.mulf %170, %169 : vector<6x12xf32>
    %172 = arith.addf %167, %171 : vector<6x12xf32>
    %c0_120 = arith.constant 0 : index
    %c3_121 = arith.constant 3 : index
    %c0_122 = arith.constant 0 : index
    %c0_123 = arith.constant 0 : index
    %173 = vector.load %arg3[%c0_120, %c3_121, %c0_122, %c0_123] : memref<1x4x8x16xf32, #tpu.memory_space<vmem>>, vector<1x1x6x12xf32>
    %174 = vector.shape_cast %173 : vector<1x1x6x12xf32> to vector<6x12xf32>
    %175 = vector.broadcast %5 : f32 to vector<6x12xf32>
    %176 = arith.mulf %175, %174 : vector<6x12xf32>
    %177 = arith.addf %172, %176 : vector<6x12xf32>
    %c0_124 = arith.constant 0 : index
    %c2_125 = arith.constant 2 : index
    %c0_126 = arith.constant 0 : index
    %c2_127 = arith.constant 2 : index
    %178 = vector.load %arg3[%c0_124, %c2_125, %c0_126, %c2_127] : memref<1x4x8x16xf32, #tpu.memory_space<vmem>>, vector<1x1x6x12xf32>
    %179 = vector.shape_cast %178 : vector<1x1x6x12xf32> to vector<6x12xf32>
    %180 = vector.broadcast %6 : f32 to vector<6x12xf32>
    %181 = arith.mulf %180, %179 : vector<6x12xf32>
    %182 = arith.addf %177, %181 : vector<6x12xf32>
    %c0_128 = arith.constant 0 : index
    %c3_129 = arith.constant 3 : index
    %c0_130 = arith.constant 0 : index
    %c2_131 = arith.constant 2 : index
    %183 = vector.load %arg3[%c0_128, %c3_129, %c0_130, %c2_131] : memref<1x4x8x16xf32, #tpu.memory_space<vmem>>, vector<1x1x6x12xf32>
    %184 = vector.shape_cast %183 : vector<1x1x6x12xf32> to vector<6x12xf32>
    %185 = vector.broadcast %7 : f32 to vector<6x12xf32>
    %186 = arith.mulf %185, %184 : vector<6x12xf32>
    %187 = arith.addf %182, %186 : vector<6x12xf32>
    %c0_132 = arith.constant 0 : index
    %c2_133 = arith.constant 2 : index
    %c0_134 = arith.constant 0 : index
    %c4_135 = arith.constant 4 : index
    %188 = vector.load %arg3[%c0_132, %c2_133, %c0_134, %c4_135] : memref<1x4x8x16xf32, #tpu.memory_space<vmem>>, vector<1x1x6x12xf32>
    %189 = vector.shape_cast %188 : vector<1x1x6x12xf32> to vector<6x12xf32>
    %190 = vector.broadcast %8 : f32 to vector<6x12xf32>
    %191 = arith.mulf %190, %189 : vector<6x12xf32>
    %192 = arith.addf %187, %191 : vector<6x12xf32>
    %c0_136 = arith.constant 0 : index
    %c3_137 = arith.constant 3 : index
    %c0_138 = arith.constant 0 : index
    %c4_139 = arith.constant 4 : index
    %193 = vector.load %arg3[%c0_136, %c3_137, %c0_138, %c4_139] : memref<1x4x8x16xf32, #tpu.memory_space<vmem>>, vector<1x1x6x12xf32>
    %194 = vector.shape_cast %193 : vector<1x1x6x12xf32> to vector<6x12xf32>
    %195 = vector.broadcast %9 : f32 to vector<6x12xf32>
    %196 = arith.mulf %195, %194 : vector<6x12xf32>
    %197 = arith.addf %192, %196 : vector<6x12xf32>
    %c0_140 = arith.constant 0 : index
    %c1_141 = arith.constant 1 : index
    %c1_142 = arith.constant 1 : index
    %c0_143 = arith.constant 0 : index
    %198 = vector.load %arg3[%c0_140, %c1_141, %c1_142, %c0_143] : memref<1x4x8x16xf32, #tpu.memory_space<vmem>>, vector<1x1x6x12xf32>
    %199 = vector.shape_cast %198 : vector<1x1x6x12xf32> to vector<6x12xf32>
    %200 = vector.broadcast %10 : f32 to vector<6x12xf32>
    %201 = arith.mulf %200, %199 : vector<6x12xf32>
    %202 = arith.addf %197, %201 : vector<6x12xf32>
    %c0_144 = arith.constant 0 : index
    %c0_145 = arith.constant 0 : index
    %c1_146 = arith.constant 1 : index
    %c2_147 = arith.constant 2 : index
    %203 = vector.load %arg3[%c0_144, %c0_145, %c1_146, %c2_147] : memref<1x4x8x16xf32, #tpu.memory_space<vmem>>, vector<1x1x6x12xf32>
    %204 = vector.shape_cast %203 : vector<1x1x6x12xf32> to vector<6x12xf32>
    %205 = vector.broadcast %11 : f32 to vector<6x12xf32>
    %206 = arith.mulf %205, %204 : vector<6x12xf32>
    %207 = arith.addf %202, %206 : vector<6x12xf32>
    %c0_148 = arith.constant 0 : index
    %c1_149 = arith.constant 1 : index
    %c1_150 = arith.constant 1 : index
    %c2_151 = arith.constant 2 : index
    %208 = vector.load %arg3[%c0_148, %c1_149, %c1_150, %c2_151] : memref<1x4x8x16xf32, #tpu.memory_space<vmem>>, vector<1x1x6x12xf32>
    %209 = vector.shape_cast %208 : vector<1x1x6x12xf32> to vector<6x12xf32>
    %210 = vector.broadcast %12 : f32 to vector<6x12xf32>
    %211 = arith.mulf %210, %209 : vector<6x12xf32>
    %212 = arith.addf %207, %211 : vector<6x12xf32>
    %c0_152 = arith.constant 0 : index
    %c0_153 = arith.constant 0 : index
    %c1_154 = arith.constant 1 : index
    %c4_155 = arith.constant 4 : index
    %213 = vector.load %arg3[%c0_152, %c0_153, %c1_154, %c4_155] : memref<1x4x8x16xf32, #tpu.memory_space<vmem>>, vector<1x1x6x12xf32>
    %214 = vector.shape_cast %213 : vector<1x1x6x12xf32> to vector<6x12xf32>
    %215 = vector.broadcast %13 : f32 to vector<6x12xf32>
    %216 = arith.mulf %215, %214 : vector<6x12xf32>
    %217 = arith.addf %212, %216 : vector<6x12xf32>
    %c0_156 = arith.constant 0 : index
    %c1_157 = arith.constant 1 : index
    %c1_158 = arith.constant 1 : index
    %c4_159 = arith.constant 4 : index
    %218 = vector.load %arg3[%c0_156, %c1_157, %c1_158, %c4_159] : memref<1x4x8x16xf32, #tpu.memory_space<vmem>>, vector<1x1x6x12xf32>
    %219 = vector.shape_cast %218 : vector<1x1x6x12xf32> to vector<6x12xf32>
    %220 = vector.broadcast %14 : f32 to vector<6x12xf32>
    %221 = arith.mulf %220, %219 : vector<6x12xf32>
    %222 = arith.addf %217, %221 : vector<6x12xf32>
    %c0_160 = arith.constant 0 : index
    %c3_161 = arith.constant 3 : index
    %c1_162 = arith.constant 1 : index
    %c0_163 = arith.constant 0 : index
    %223 = vector.load %arg3[%c0_160, %c3_161, %c1_162, %c0_163] : memref<1x4x8x16xf32, #tpu.memory_space<vmem>>, vector<1x1x6x12xf32>
    %224 = vector.shape_cast %223 : vector<1x1x6x12xf32> to vector<6x12xf32>
    %225 = vector.broadcast %15 : f32 to vector<6x12xf32>
    %226 = arith.mulf %225, %224 : vector<6x12xf32>
    %227 = arith.addf %222, %226 : vector<6x12xf32>
    %c0_164 = arith.constant 0 : index
    %c2_165 = arith.constant 2 : index
    %c1_166 = arith.constant 1 : index
    %c2_167 = arith.constant 2 : index
    %228 = vector.load %arg3[%c0_164, %c2_165, %c1_166, %c2_167] : memref<1x4x8x16xf32, #tpu.memory_space<vmem>>, vector<1x1x6x12xf32>
    %229 = vector.shape_cast %228 : vector<1x1x6x12xf32> to vector<6x12xf32>
    %230 = vector.broadcast %16 : f32 to vector<6x12xf32>
    %231 = arith.mulf %230, %229 : vector<6x12xf32>
    %232 = arith.addf %227, %231 : vector<6x12xf32>
    %c0_168 = arith.constant 0 : index
    %c3_169 = arith.constant 3 : index
    %c1_170 = arith.constant 1 : index
    %c2_171 = arith.constant 2 : index
    %233 = vector.load %arg3[%c0_168, %c3_169, %c1_170, %c2_171] : memref<1x4x8x16xf32, #tpu.memory_space<vmem>>, vector<1x1x6x12xf32>
    %234 = vector.shape_cast %233 : vector<1x1x6x12xf32> to vector<6x12xf32>
    %235 = vector.broadcast %17 : f32 to vector<6x12xf32>
    %236 = arith.mulf %235, %234 : vector<6x12xf32>
    %237 = arith.addf %232, %236 : vector<6x12xf32>
    %c0_172 = arith.constant 0 : index
    %c2_173 = arith.constant 2 : index
    %c1_174 = arith.constant 1 : index
    %c4_175 = arith.constant 4 : index
    %238 = vector.load %arg3[%c0_172, %c2_173, %c1_174, %c4_175] : memref<1x4x8x16xf32, #tpu.memory_space<vmem>>, vector<1x1x6x12xf32>
    %239 = vector.shape_cast %238 : vector<1x1x6x12xf32> to vector<6x12xf32>
    %240 = vector.broadcast %18 : f32 to vector<6x12xf32>
    %241 = arith.mulf %240, %239 : vector<6x12xf32>
    %242 = arith.addf %237, %241 : vector<6x12xf32>
    %c0_176 = arith.constant 0 : index
    %c3_177 = arith.constant 3 : index
    %c1_178 = arith.constant 1 : index
    %c4_179 = arith.constant 4 : index
    %243 = vector.load %arg3[%c0_176, %c3_177, %c1_178, %c4_179] : memref<1x4x8x16xf32, #tpu.memory_space<vmem>>, vector<1x1x6x12xf32>
    %244 = vector.shape_cast %243 : vector<1x1x6x12xf32> to vector<6x12xf32>
    %245 = vector.broadcast %19 : f32 to vector<6x12xf32>
    %246 = arith.mulf %245, %244 : vector<6x12xf32>
    %247 = arith.addf %242, %246 : vector<6x12xf32>
    %c0_180 = arith.constant 0 : index
    %c1_181 = arith.constant 1 : index
    %c2_182 = arith.constant 2 : index
    %c0_183 = arith.constant 0 : index
    %248 = vector.load %arg3[%c0_180, %c1_181, %c2_182, %c0_183] : memref<1x4x8x16xf32, #tpu.memory_space<vmem>>, vector<1x1x6x12xf32>
    %249 = vector.shape_cast %248 : vector<1x1x6x12xf32> to vector<6x12xf32>
    %250 = vector.broadcast %20 : f32 to vector<6x12xf32>
    %251 = arith.mulf %250, %249 : vector<6x12xf32>
    %252 = arith.addf %247, %251 : vector<6x12xf32>
    %c0_184 = arith.constant 0 : index
    %c0_185 = arith.constant 0 : index
    %c2_186 = arith.constant 2 : index
    %c2_187 = arith.constant 2 : index
    %253 = vector.load %arg3[%c0_184, %c0_185, %c2_186, %c2_187] : memref<1x4x8x16xf32, #tpu.memory_space<vmem>>, vector<1x1x6x12xf32>
    %254 = vector.shape_cast %253 : vector<1x1x6x12xf32> to vector<6x12xf32>
    %255 = vector.broadcast %21 : f32 to vector<6x12xf32>
    %256 = arith.mulf %255, %254 : vector<6x12xf32>
    %257 = arith.addf %252, %256 : vector<6x12xf32>
    %c0_188 = arith.constant 0 : index
    %c1_189 = arith.constant 1 : index
    %c2_190 = arith.constant 2 : index
    %c2_191 = arith.constant 2 : index
    %258 = vector.load %arg3[%c0_188, %c1_189, %c2_190, %c2_191] : memref<1x4x8x16xf32, #tpu.memory_space<vmem>>, vector<1x1x6x12xf32>
    %259 = vector.shape_cast %258 : vector<1x1x6x12xf32> to vector<6x12xf32>
    %260 = vector.broadcast %22 : f32 to vector<6x12xf32>
    %261 = arith.mulf %260, %259 : vector<6x12xf32>
    %262 = arith.addf %257, %261 : vector<6x12xf32>
    %c0_192 = arith.constant 0 : index
    %c0_193 = arith.constant 0 : index
    %c2_194 = arith.constant 2 : index
    %c4_195 = arith.constant 4 : index
    %263 = vector.load %arg3[%c0_192, %c0_193, %c2_194, %c4_195] : memref<1x4x8x16xf32, #tpu.memory_space<vmem>>, vector<1x1x6x12xf32>
    %264 = vector.shape_cast %263 : vector<1x1x6x12xf32> to vector<6x12xf32>
    %265 = vector.broadcast %23 : f32 to vector<6x12xf32>
    %266 = arith.mulf %265, %264 : vector<6x12xf32>
    %267 = arith.addf %262, %266 : vector<6x12xf32>
    %c0_196 = arith.constant 0 : index
    %c1_197 = arith.constant 1 : index
    %c2_198 = arith.constant 2 : index
    %c4_199 = arith.constant 4 : index
    %268 = vector.load %arg3[%c0_196, %c1_197, %c2_198, %c4_199] : memref<1x4x8x16xf32, #tpu.memory_space<vmem>>, vector<1x1x6x12xf32>
    %269 = vector.shape_cast %268 : vector<1x1x6x12xf32> to vector<6x12xf32>
    %270 = vector.broadcast %24 : f32 to vector<6x12xf32>
    %271 = arith.mulf %270, %269 : vector<6x12xf32>
    %272 = arith.addf %267, %271 : vector<6x12xf32>
    %273 = arith.maximumf %148, %272 : vector<6x12xf32>
    %c0_200 = arith.constant 0 : index
    %c2_201 = arith.constant 2 : index
    %c0_202 = arith.constant 0 : index
    %c0_203 = arith.constant 0 : index
    %274 = vector.load %arg3[%c0_200, %c2_201, %c0_202, %c0_203] : memref<1x4x8x16xf32, #tpu.memory_space<vmem>>, vector<1x1x6x12xf32>
    %275 = vector.shape_cast %274 : vector<1x1x6x12xf32> to vector<6x12xf32>
    %276 = vector.broadcast %0 : f32 to vector<6x12xf32>
    %277 = arith.mulf %276, %275 : vector<6x12xf32>
    %c0_204 = arith.constant 0 : index
    %c3_205 = arith.constant 3 : index
    %c0_206 = arith.constant 0 : index
    %c0_207 = arith.constant 0 : index
    %278 = vector.load %arg3[%c0_204, %c3_205, %c0_206, %c0_207] : memref<1x4x8x16xf32, #tpu.memory_space<vmem>>, vector<1x1x6x12xf32>
    %279 = vector.shape_cast %278 : vector<1x1x6x12xf32> to vector<6x12xf32>
    %280 = vector.broadcast %1 : f32 to vector<6x12xf32>
    %281 = arith.mulf %280, %279 : vector<6x12xf32>
    %282 = arith.addf %277, %281 : vector<6x12xf32>
    %c0_208 = arith.constant 0 : index
    %c2_209 = arith.constant 2 : index
    %c0_210 = arith.constant 0 : index
    %c2_211 = arith.constant 2 : index
    %283 = vector.load %arg3[%c0_208, %c2_209, %c0_210, %c2_211] : memref<1x4x8x16xf32, #tpu.memory_space<vmem>>, vector<1x1x6x12xf32>
    %284 = vector.shape_cast %283 : vector<1x1x6x12xf32> to vector<6x12xf32>
    %285 = vector.broadcast %2 : f32 to vector<6x12xf32>
    %286 = arith.mulf %285, %284 : vector<6x12xf32>
    %287 = arith.addf %282, %286 : vector<6x12xf32>
    %c0_212 = arith.constant 0 : index
    %c3_213 = arith.constant 3 : index
    %c0_214 = arith.constant 0 : index
    %c2_215 = arith.constant 2 : index
    %288 = vector.load %arg3[%c0_212, %c3_213, %c0_214, %c2_215] : memref<1x4x8x16xf32, #tpu.memory_space<vmem>>, vector<1x1x6x12xf32>
    %289 = vector.shape_cast %288 : vector<1x1x6x12xf32> to vector<6x12xf32>
    %290 = vector.broadcast %3 : f32 to vector<6x12xf32>
    %291 = arith.mulf %290, %289 : vector<6x12xf32>
    %292 = arith.addf %287, %291 : vector<6x12xf32>
    %c0_216 = arith.constant 0 : index
    %c2_217 = arith.constant 2 : index
    %c0_218 = arith.constant 0 : index
    %c4_219 = arith.constant 4 : index
    %293 = vector.load %arg3[%c0_216, %c2_217, %c0_218, %c4_219] : memref<1x4x8x16xf32, #tpu.memory_space<vmem>>, vector<1x1x6x12xf32>
    %294 = vector.shape_cast %293 : vector<1x1x6x12xf32> to vector<6x12xf32>
    %295 = vector.broadcast %4 : f32 to vector<6x12xf32>
    %296 = arith.mulf %295, %294 : vector<6x12xf32>
    %297 = arith.addf %292, %296 : vector<6x12xf32>
    %c0_220 = arith.constant 0 : index
    %c0_221 = arith.constant 0 : index
    %c1_222 = arith.constant 1 : index
    %c0_223 = arith.constant 0 : index
    %298 = vector.load %arg3[%c0_220, %c0_221, %c1_222, %c0_223] : memref<1x4x8x16xf32, #tpu.memory_space<vmem>>, vector<1x1x6x12xf32>
    %299 = vector.shape_cast %298 : vector<1x1x6x12xf32> to vector<6x12xf32>
    %300 = vector.broadcast %5 : f32 to vector<6x12xf32>
    %301 = arith.mulf %300, %299 : vector<6x12xf32>
    %302 = arith.addf %297, %301 : vector<6x12xf32>
    %c0_224 = arith.constant 0 : index
    %c1_225 = arith.constant 1 : index
    %c1_226 = arith.constant 1 : index
    %c0_227 = arith.constant 0 : index
    %303 = vector.load %arg3[%c0_224, %c1_225, %c1_226, %c0_227] : memref<1x4x8x16xf32, #tpu.memory_space<vmem>>, vector<1x1x6x12xf32>
    %304 = vector.shape_cast %303 : vector<1x1x6x12xf32> to vector<6x12xf32>
    %305 = vector.broadcast %6 : f32 to vector<6x12xf32>
    %306 = arith.mulf %305, %304 : vector<6x12xf32>
    %307 = arith.addf %302, %306 : vector<6x12xf32>
    %c0_228 = arith.constant 0 : index
    %c0_229 = arith.constant 0 : index
    %c1_230 = arith.constant 1 : index
    %c2_231 = arith.constant 2 : index
    %308 = vector.load %arg3[%c0_228, %c0_229, %c1_230, %c2_231] : memref<1x4x8x16xf32, #tpu.memory_space<vmem>>, vector<1x1x6x12xf32>
    %309 = vector.shape_cast %308 : vector<1x1x6x12xf32> to vector<6x12xf32>
    %310 = vector.broadcast %7 : f32 to vector<6x12xf32>
    %311 = arith.mulf %310, %309 : vector<6x12xf32>
    %312 = arith.addf %307, %311 : vector<6x12xf32>
    %c0_232 = arith.constant 0 : index
    %c1_233 = arith.constant 1 : index
    %c1_234 = arith.constant 1 : index
    %c2_235 = arith.constant 2 : index
    %313 = vector.load %arg3[%c0_232, %c1_233, %c1_234, %c2_235] : memref<1x4x8x16xf32, #tpu.memory_space<vmem>>, vector<1x1x6x12xf32>
    %314 = vector.shape_cast %313 : vector<1x1x6x12xf32> to vector<6x12xf32>
    %315 = vector.broadcast %8 : f32 to vector<6x12xf32>
    %316 = arith.mulf %315, %314 : vector<6x12xf32>
    %317 = arith.addf %312, %316 : vector<6x12xf32>
    %c0_236 = arith.constant 0 : index
    %c0_237 = arith.constant 0 : index
    %c1_238 = arith.constant 1 : index
    %c4_239 = arith.constant 4 : index
    %318 = vector.load %arg3[%c0_236, %c0_237, %c1_238, %c4_239] : memref<1x4x8x16xf32, #tpu.memory_space<vmem>>, vector<1x1x6x12xf32>
    %319 = vector.shape_cast %318 : vector<1x1x6x12xf32> to vector<6x12xf32>
    %320 = vector.broadcast %9 : f32 to vector<6x12xf32>
    %321 = arith.mulf %320, %319 : vector<6x12xf32>
    %322 = arith.addf %317, %321 : vector<6x12xf32>
    %c0_240 = arith.constant 0 : index
    %c2_241 = arith.constant 2 : index
    %c1_242 = arith.constant 1 : index
    %c0_243 = arith.constant 0 : index
    %323 = vector.load %arg3[%c0_240, %c2_241, %c1_242, %c0_243] : memref<1x4x8x16xf32, #tpu.memory_space<vmem>>, vector<1x1x6x12xf32>
    %324 = vector.shape_cast %323 : vector<1x1x6x12xf32> to vector<6x12xf32>
    %325 = vector.broadcast %10 : f32 to vector<6x12xf32>
    %326 = arith.mulf %325, %324 : vector<6x12xf32>
    %327 = arith.addf %322, %326 : vector<6x12xf32>
    %c0_244 = arith.constant 0 : index
    %c3_245 = arith.constant 3 : index
    %c1_246 = arith.constant 1 : index
    %c0_247 = arith.constant 0 : index
    %328 = vector.load %arg3[%c0_244, %c3_245, %c1_246, %c0_247] : memref<1x4x8x16xf32, #tpu.memory_space<vmem>>, vector<1x1x6x12xf32>
    %329 = vector.shape_cast %328 : vector<1x1x6x12xf32> to vector<6x12xf32>
    %330 = vector.broadcast %11 : f32 to vector<6x12xf32>
    %331 = arith.mulf %330, %329 : vector<6x12xf32>
    %332 = arith.addf %327, %331 : vector<6x12xf32>
    %c0_248 = arith.constant 0 : index
    %c2_249 = arith.constant 2 : index
    %c1_250 = arith.constant 1 : index
    %c2_251 = arith.constant 2 : index
    %333 = vector.load %arg3[%c0_248, %c2_249, %c1_250, %c2_251] : memref<1x4x8x16xf32, #tpu.memory_space<vmem>>, vector<1x1x6x12xf32>
    %334 = vector.shape_cast %333 : vector<1x1x6x12xf32> to vector<6x12xf32>
    %335 = vector.broadcast %12 : f32 to vector<6x12xf32>
    %336 = arith.mulf %335, %334 : vector<6x12xf32>
    %337 = arith.addf %332, %336 : vector<6x12xf32>
    %c0_252 = arith.constant 0 : index
    %c3_253 = arith.constant 3 : index
    %c1_254 = arith.constant 1 : index
    %c2_255 = arith.constant 2 : index
    %338 = vector.load %arg3[%c0_252, %c3_253, %c1_254, %c2_255] : memref<1x4x8x16xf32, #tpu.memory_space<vmem>>, vector<1x1x6x12xf32>
    %339 = vector.shape_cast %338 : vector<1x1x6x12xf32> to vector<6x12xf32>
    %340 = vector.broadcast %13 : f32 to vector<6x12xf32>
    %341 = arith.mulf %340, %339 : vector<6x12xf32>
    %342 = arith.addf %337, %341 : vector<6x12xf32>
    %c0_256 = arith.constant 0 : index
    %c2_257 = arith.constant 2 : index
    %c1_258 = arith.constant 1 : index
    %c4_259 = arith.constant 4 : index
    %343 = vector.load %arg3[%c0_256, %c2_257, %c1_258, %c4_259] : memref<1x4x8x16xf32, #tpu.memory_space<vmem>>, vector<1x1x6x12xf32>
    %344 = vector.shape_cast %343 : vector<1x1x6x12xf32> to vector<6x12xf32>
    %345 = vector.broadcast %14 : f32 to vector<6x12xf32>
    %346 = arith.mulf %345, %344 : vector<6x12xf32>
    %347 = arith.addf %342, %346 : vector<6x12xf32>
    %c0_260 = arith.constant 0 : index
    %c0_261 = arith.constant 0 : index
    %c2_262 = arith.constant 2 : index
    %c0_263 = arith.constant 0 : index
    %348 = vector.load %arg3[%c0_260, %c0_261, %c2_262, %c0_263] : memref<1x4x8x16xf32, #tpu.memory_space<vmem>>, vector<1x1x6x12xf32>
    %349 = vector.shape_cast %348 : vector<1x1x6x12xf32> to vector<6x12xf32>
    %350 = vector.broadcast %15 : f32 to vector<6x12xf32>
    %351 = arith.mulf %350, %349 : vector<6x12xf32>
    %352 = arith.addf %347, %351 : vector<6x12xf32>
    %c0_264 = arith.constant 0 : index
    %c1_265 = arith.constant 1 : index
    %c2_266 = arith.constant 2 : index
    %c0_267 = arith.constant 0 : index
    %353 = vector.load %arg3[%c0_264, %c1_265, %c2_266, %c0_267] : memref<1x4x8x16xf32, #tpu.memory_space<vmem>>, vector<1x1x6x12xf32>
    %354 = vector.shape_cast %353 : vector<1x1x6x12xf32> to vector<6x12xf32>
    %355 = vector.broadcast %16 : f32 to vector<6x12xf32>
    %356 = arith.mulf %355, %354 : vector<6x12xf32>
    %357 = arith.addf %352, %356 : vector<6x12xf32>
    %c0_268 = arith.constant 0 : index
    %c0_269 = arith.constant 0 : index
    %c2_270 = arith.constant 2 : index
    %c2_271 = arith.constant 2 : index
    %358 = vector.load %arg3[%c0_268, %c0_269, %c2_270, %c2_271] : memref<1x4x8x16xf32, #tpu.memory_space<vmem>>, vector<1x1x6x12xf32>
    %359 = vector.shape_cast %358 : vector<1x1x6x12xf32> to vector<6x12xf32>
    %360 = vector.broadcast %17 : f32 to vector<6x12xf32>
    %361 = arith.mulf %360, %359 : vector<6x12xf32>
    %362 = arith.addf %357, %361 : vector<6x12xf32>
    %c0_272 = arith.constant 0 : index
    %c1_273 = arith.constant 1 : index
    %c2_274 = arith.constant 2 : index
    %c2_275 = arith.constant 2 : index
    %363 = vector.load %arg3[%c0_272, %c1_273, %c2_274, %c2_275] : memref<1x4x8x16xf32, #tpu.memory_space<vmem>>, vector<1x1x6x12xf32>
    %364 = vector.shape_cast %363 : vector<1x1x6x12xf32> to vector<6x12xf32>
    %365 = vector.broadcast %18 : f32 to vector<6x12xf32>
    %366 = arith.mulf %365, %364 : vector<6x12xf32>
    %367 = arith.addf %362, %366 : vector<6x12xf32>
    %c0_276 = arith.constant 0 : index
    %c0_277 = arith.constant 0 : index
    %c2_278 = arith.constant 2 : index
    %c4_279 = arith.constant 4 : index
    %368 = vector.load %arg3[%c0_276, %c0_277, %c2_278, %c4_279] : memref<1x4x8x16xf32, #tpu.memory_space<vmem>>, vector<1x1x6x12xf32>
    %369 = vector.shape_cast %368 : vector<1x1x6x12xf32> to vector<6x12xf32>
    %370 = vector.broadcast %19 : f32 to vector<6x12xf32>
    %371 = arith.mulf %370, %369 : vector<6x12xf32>
    %372 = arith.addf %367, %371 : vector<6x12xf32>
    %c0_280 = arith.constant 0 : index
    %c2_281 = arith.constant 2 : index
    %c2_282 = arith.constant 2 : index
    %c0_283 = arith.constant 0 : index
    %373 = vector.load %arg3[%c0_280, %c2_281, %c2_282, %c0_283] : memref<1x4x8x16xf32, #tpu.memory_space<vmem>>, vector<1x1x6x12xf32>
    %374 = vector.shape_cast %373 : vector<1x1x6x12xf32> to vector<6x12xf32>
    %375 = vector.broadcast %20 : f32 to vector<6x12xf32>
    %376 = arith.mulf %375, %374 : vector<6x12xf32>
    %377 = arith.addf %372, %376 : vector<6x12xf32>
    %c0_284 = arith.constant 0 : index
    %c3_285 = arith.constant 3 : index
    %c2_286 = arith.constant 2 : index
    %c0_287 = arith.constant 0 : index
    %378 = vector.load %arg3[%c0_284, %c3_285, %c2_286, %c0_287] : memref<1x4x8x16xf32, #tpu.memory_space<vmem>>, vector<1x1x6x12xf32>
    %379 = vector.shape_cast %378 : vector<1x1x6x12xf32> to vector<6x12xf32>
    %380 = vector.broadcast %21 : f32 to vector<6x12xf32>
    %381 = arith.mulf %380, %379 : vector<6x12xf32>
    %382 = arith.addf %377, %381 : vector<6x12xf32>
    %c0_288 = arith.constant 0 : index
    %c2_289 = arith.constant 2 : index
    %c2_290 = arith.constant 2 : index
    %c2_291 = arith.constant 2 : index
    %383 = vector.load %arg3[%c0_288, %c2_289, %c2_290, %c2_291] : memref<1x4x8x16xf32, #tpu.memory_space<vmem>>, vector<1x1x6x12xf32>
    %384 = vector.shape_cast %383 : vector<1x1x6x12xf32> to vector<6x12xf32>
    %385 = vector.broadcast %22 : f32 to vector<6x12xf32>
    %386 = arith.mulf %385, %384 : vector<6x12xf32>
    %387 = arith.addf %382, %386 : vector<6x12xf32>
    %c0_292 = arith.constant 0 : index
    %c3_293 = arith.constant 3 : index
    %c2_294 = arith.constant 2 : index
    %c2_295 = arith.constant 2 : index
    %388 = vector.load %arg3[%c0_292, %c3_293, %c2_294, %c2_295] : memref<1x4x8x16xf32, #tpu.memory_space<vmem>>, vector<1x1x6x12xf32>
    %389 = vector.shape_cast %388 : vector<1x1x6x12xf32> to vector<6x12xf32>
    %390 = vector.broadcast %23 : f32 to vector<6x12xf32>
    %391 = arith.mulf %390, %389 : vector<6x12xf32>
    %392 = arith.addf %387, %391 : vector<6x12xf32>
    %c0_296 = arith.constant 0 : index
    %c2_297 = arith.constant 2 : index
    %c2_298 = arith.constant 2 : index
    %c4_299 = arith.constant 4 : index
    %393 = vector.load %arg3[%c0_296, %c2_297, %c2_298, %c4_299] : memref<1x4x8x16xf32, #tpu.memory_space<vmem>>, vector<1x1x6x12xf32>
    %394 = vector.shape_cast %393 : vector<1x1x6x12xf32> to vector<6x12xf32>
    %395 = vector.broadcast %24 : f32 to vector<6x12xf32>
    %396 = arith.mulf %395, %394 : vector<6x12xf32>
    %397 = arith.addf %392, %396 : vector<6x12xf32>
    %398 = arith.maximumf %273, %397 : vector<6x12xf32>
    %c0_300 = arith.constant 0 : index
    %c3_301 = arith.constant 3 : index
    %c0_302 = arith.constant 0 : index
    %c0_303 = arith.constant 0 : index
    %399 = vector.load %arg3[%c0_300, %c3_301, %c0_302, %c0_303] : memref<1x4x8x16xf32, #tpu.memory_space<vmem>>, vector<1x1x6x12xf32>
    %400 = vector.shape_cast %399 : vector<1x1x6x12xf32> to vector<6x12xf32>
    %401 = vector.broadcast %0 : f32 to vector<6x12xf32>
    %402 = arith.mulf %401, %400 : vector<6x12xf32>
    %c0_304 = arith.constant 0 : index
    %c2_305 = arith.constant 2 : index
    %c0_306 = arith.constant 0 : index
    %c2_307 = arith.constant 2 : index
    %403 = vector.load %arg3[%c0_304, %c2_305, %c0_306, %c2_307] : memref<1x4x8x16xf32, #tpu.memory_space<vmem>>, vector<1x1x6x12xf32>
    %404 = vector.shape_cast %403 : vector<1x1x6x12xf32> to vector<6x12xf32>
    %405 = vector.broadcast %1 : f32 to vector<6x12xf32>
    %406 = arith.mulf %405, %404 : vector<6x12xf32>
    %407 = arith.addf %402, %406 : vector<6x12xf32>
    %c0_308 = arith.constant 0 : index
    %c3_309 = arith.constant 3 : index
    %c0_310 = arith.constant 0 : index
    %c2_311 = arith.constant 2 : index
    %408 = vector.load %arg3[%c0_308, %c3_309, %c0_310, %c2_311] : memref<1x4x8x16xf32, #tpu.memory_space<vmem>>, vector<1x1x6x12xf32>
    %409 = vector.shape_cast %408 : vector<1x1x6x12xf32> to vector<6x12xf32>
    %410 = vector.broadcast %2 : f32 to vector<6x12xf32>
    %411 = arith.mulf %410, %409 : vector<6x12xf32>
    %412 = arith.addf %407, %411 : vector<6x12xf32>
    %c0_312 = arith.constant 0 : index
    %c2_313 = arith.constant 2 : index
    %c0_314 = arith.constant 0 : index
    %c4_315 = arith.constant 4 : index
    %413 = vector.load %arg3[%c0_312, %c2_313, %c0_314, %c4_315] : memref<1x4x8x16xf32, #tpu.memory_space<vmem>>, vector<1x1x6x12xf32>
    %414 = vector.shape_cast %413 : vector<1x1x6x12xf32> to vector<6x12xf32>
    %415 = vector.broadcast %3 : f32 to vector<6x12xf32>
    %416 = arith.mulf %415, %414 : vector<6x12xf32>
    %417 = arith.addf %412, %416 : vector<6x12xf32>
    %c0_316 = arith.constant 0 : index
    %c3_317 = arith.constant 3 : index
    %c0_318 = arith.constant 0 : index
    %c4_319 = arith.constant 4 : index
    %418 = vector.load %arg3[%c0_316, %c3_317, %c0_318, %c4_319] : memref<1x4x8x16xf32, #tpu.memory_space<vmem>>, vector<1x1x6x12xf32>
    %419 = vector.shape_cast %418 : vector<1x1x6x12xf32> to vector<6x12xf32>
    %420 = vector.broadcast %4 : f32 to vector<6x12xf32>
    %421 = arith.mulf %420, %419 : vector<6x12xf32>
    %422 = arith.addf %417, %421 : vector<6x12xf32>
    %c0_320 = arith.constant 0 : index
    %c1_321 = arith.constant 1 : index
    %c1_322 = arith.constant 1 : index
    %c0_323 = arith.constant 0 : index
    %423 = vector.load %arg3[%c0_320, %c1_321, %c1_322, %c0_323] : memref<1x4x8x16xf32, #tpu.memory_space<vmem>>, vector<1x1x6x12xf32>
    %424 = vector.shape_cast %423 : vector<1x1x6x12xf32> to vector<6x12xf32>
    %425 = vector.broadcast %5 : f32 to vector<6x12xf32>
    %426 = arith.mulf %425, %424 : vector<6x12xf32>
    %427 = arith.addf %422, %426 : vector<6x12xf32>
    %c0_324 = arith.constant 0 : index
    %c0_325 = arith.constant 0 : index
    %c1_326 = arith.constant 1 : index
    %c2_327 = arith.constant 2 : index
    %428 = vector.load %arg3[%c0_324, %c0_325, %c1_326, %c2_327] : memref<1x4x8x16xf32, #tpu.memory_space<vmem>>, vector<1x1x6x12xf32>
    %429 = vector.shape_cast %428 : vector<1x1x6x12xf32> to vector<6x12xf32>
    %430 = vector.broadcast %6 : f32 to vector<6x12xf32>
    %431 = arith.mulf %430, %429 : vector<6x12xf32>
    %432 = arith.addf %427, %431 : vector<6x12xf32>
    %c0_328 = arith.constant 0 : index
    %c1_329 = arith.constant 1 : index
    %c1_330 = arith.constant 1 : index
    %c2_331 = arith.constant 2 : index
    %433 = vector.load %arg3[%c0_328, %c1_329, %c1_330, %c2_331] : memref<1x4x8x16xf32, #tpu.memory_space<vmem>>, vector<1x1x6x12xf32>
    %434 = vector.shape_cast %433 : vector<1x1x6x12xf32> to vector<6x12xf32>
    %435 = vector.broadcast %7 : f32 to vector<6x12xf32>
    %436 = arith.mulf %435, %434 : vector<6x12xf32>
    %437 = arith.addf %432, %436 : vector<6x12xf32>
    %c0_332 = arith.constant 0 : index
    %c0_333 = arith.constant 0 : index
    %c1_334 = arith.constant 1 : index
    %c4_335 = arith.constant 4 : index
    %438 = vector.load %arg3[%c0_332, %c0_333, %c1_334, %c4_335] : memref<1x4x8x16xf32, #tpu.memory_space<vmem>>, vector<1x1x6x12xf32>
    %439 = vector.shape_cast %438 : vector<1x1x6x12xf32> to vector<6x12xf32>
    %440 = vector.broadcast %8 : f32 to vector<6x12xf32>
    %441 = arith.mulf %440, %439 : vector<6x12xf32>
    %442 = arith.addf %437, %441 : vector<6x12xf32>
    %c0_336 = arith.constant 0 : index
    %c1_337 = arith.constant 1 : index
    %c1_338 = arith.constant 1 : index
    %c4_339 = arith.constant 4 : index
    %443 = vector.load %arg3[%c0_336, %c1_337, %c1_338, %c4_339] : memref<1x4x8x16xf32, #tpu.memory_space<vmem>>, vector<1x1x6x12xf32>
    %444 = vector.shape_cast %443 : vector<1x1x6x12xf32> to vector<6x12xf32>
    %445 = vector.broadcast %9 : f32 to vector<6x12xf32>
    %446 = arith.mulf %445, %444 : vector<6x12xf32>
    %447 = arith.addf %442, %446 : vector<6x12xf32>
    %c0_340 = arith.constant 0 : index
    %c3_341 = arith.constant 3 : index
    %c1_342 = arith.constant 1 : index
    %c0_343 = arith.constant 0 : index
    %448 = vector.load %arg3[%c0_340, %c3_341, %c1_342, %c0_343] : memref<1x4x8x16xf32, #tpu.memory_space<vmem>>, vector<1x1x6x12xf32>
    %449 = vector.shape_cast %448 : vector<1x1x6x12xf32> to vector<6x12xf32>
    %450 = vector.broadcast %10 : f32 to vector<6x12xf32>
    %451 = arith.mulf %450, %449 : vector<6x12xf32>
    %452 = arith.addf %447, %451 : vector<6x12xf32>
    %c0_344 = arith.constant 0 : index
    %c2_345 = arith.constant 2 : index
    %c1_346 = arith.constant 1 : index
    %c2_347 = arith.constant 2 : index
    %453 = vector.load %arg3[%c0_344, %c2_345, %c1_346, %c2_347] : memref<1x4x8x16xf32, #tpu.memory_space<vmem>>, vector<1x1x6x12xf32>
    %454 = vector.shape_cast %453 : vector<1x1x6x12xf32> to vector<6x12xf32>
    %455 = vector.broadcast %11 : f32 to vector<6x12xf32>
    %456 = arith.mulf %455, %454 : vector<6x12xf32>
    %457 = arith.addf %452, %456 : vector<6x12xf32>
    %c0_348 = arith.constant 0 : index
    %c3_349 = arith.constant 3 : index
    %c1_350 = arith.constant 1 : index
    %c2_351 = arith.constant 2 : index
    %458 = vector.load %arg3[%c0_348, %c3_349, %c1_350, %c2_351] : memref<1x4x8x16xf32, #tpu.memory_space<vmem>>, vector<1x1x6x12xf32>
    %459 = vector.shape_cast %458 : vector<1x1x6x12xf32> to vector<6x12xf32>
    %460 = vector.broadcast %12 : f32 to vector<6x12xf32>
    %461 = arith.mulf %460, %459 : vector<6x12xf32>
    %462 = arith.addf %457, %461 : vector<6x12xf32>
    %c0_352 = arith.constant 0 : index
    %c2_353 = arith.constant 2 : index
    %c1_354 = arith.constant 1 : index
    %c4_355 = arith.constant 4 : index
    %463 = vector.load %arg3[%c0_352, %c2_353, %c1_354, %c4_355] : memref<1x4x8x16xf32, #tpu.memory_space<vmem>>, vector<1x1x6x12xf32>
    %464 = vector.shape_cast %463 : vector<1x1x6x12xf32> to vector<6x12xf32>
    %465 = vector.broadcast %13 : f32 to vector<6x12xf32>
    %466 = arith.mulf %465, %464 : vector<6x12xf32>
    %467 = arith.addf %462, %466 : vector<6x12xf32>
    %c0_356 = arith.constant 0 : index
    %c3_357 = arith.constant 3 : index
    %c1_358 = arith.constant 1 : index
    %c4_359 = arith.constant 4 : index
    %468 = vector.load %arg3[%c0_356, %c3_357, %c1_358, %c4_359] : memref<1x4x8x16xf32, #tpu.memory_space<vmem>>, vector<1x1x6x12xf32>
    %469 = vector.shape_cast %468 : vector<1x1x6x12xf32> to vector<6x12xf32>
    %470 = vector.broadcast %14 : f32 to vector<6x12xf32>
    %471 = arith.mulf %470, %469 : vector<6x12xf32>
    %472 = arith.addf %467, %471 : vector<6x12xf32>
    %c0_360 = arith.constant 0 : index
    %c1_361 = arith.constant 1 : index
    %c2_362 = arith.constant 2 : index
    %c0_363 = arith.constant 0 : index
    %473 = vector.load %arg3[%c0_360, %c1_361, %c2_362, %c0_363] : memref<1x4x8x16xf32, #tpu.memory_space<vmem>>, vector<1x1x6x12xf32>
    %474 = vector.shape_cast %473 : vector<1x1x6x12xf32> to vector<6x12xf32>
    %475 = vector.broadcast %15 : f32 to vector<6x12xf32>
    %476 = arith.mulf %475, %474 : vector<6x12xf32>
    %477 = arith.addf %472, %476 : vector<6x12xf32>
    %c0_364 = arith.constant 0 : index
    %c0_365 = arith.constant 0 : index
    %c2_366 = arith.constant 2 : index
    %c2_367 = arith.constant 2 : index
    %478 = vector.load %arg3[%c0_364, %c0_365, %c2_366, %c2_367] : memref<1x4x8x16xf32, #tpu.memory_space<vmem>>, vector<1x1x6x12xf32>
    %479 = vector.shape_cast %478 : vector<1x1x6x12xf32> to vector<6x12xf32>
    %480 = vector.broadcast %16 : f32 to vector<6x12xf32>
    %481 = arith.mulf %480, %479 : vector<6x12xf32>
    %482 = arith.addf %477, %481 : vector<6x12xf32>
    %c0_368 = arith.constant 0 : index
    %c1_369 = arith.constant 1 : index
    %c2_370 = arith.constant 2 : index
    %c2_371 = arith.constant 2 : index
    %483 = vector.load %arg3[%c0_368, %c1_369, %c2_370, %c2_371] : memref<1x4x8x16xf32, #tpu.memory_space<vmem>>, vector<1x1x6x12xf32>
    %484 = vector.shape_cast %483 : vector<1x1x6x12xf32> to vector<6x12xf32>
    %485 = vector.broadcast %17 : f32 to vector<6x12xf32>
    %486 = arith.mulf %485, %484 : vector<6x12xf32>
    %487 = arith.addf %482, %486 : vector<6x12xf32>
    %c0_372 = arith.constant 0 : index
    %c0_373 = arith.constant 0 : index
    %c2_374 = arith.constant 2 : index
    %c4_375 = arith.constant 4 : index
    %488 = vector.load %arg3[%c0_372, %c0_373, %c2_374, %c4_375] : memref<1x4x8x16xf32, #tpu.memory_space<vmem>>, vector<1x1x6x12xf32>
    %489 = vector.shape_cast %488 : vector<1x1x6x12xf32> to vector<6x12xf32>
    %490 = vector.broadcast %18 : f32 to vector<6x12xf32>
    %491 = arith.mulf %490, %489 : vector<6x12xf32>
    %492 = arith.addf %487, %491 : vector<6x12xf32>
    %c0_376 = arith.constant 0 : index
    %c1_377 = arith.constant 1 : index
    %c2_378 = arith.constant 2 : index
    %c4_379 = arith.constant 4 : index
    %493 = vector.load %arg3[%c0_376, %c1_377, %c2_378, %c4_379] : memref<1x4x8x16xf32, #tpu.memory_space<vmem>>, vector<1x1x6x12xf32>
    %494 = vector.shape_cast %493 : vector<1x1x6x12xf32> to vector<6x12xf32>
    %495 = vector.broadcast %19 : f32 to vector<6x12xf32>
    %496 = arith.mulf %495, %494 : vector<6x12xf32>
    %497 = arith.addf %492, %496 : vector<6x12xf32>
    %c0_380 = arith.constant 0 : index
    %c3_381 = arith.constant 3 : index
    %c2_382 = arith.constant 2 : index
    %c0_383 = arith.constant 0 : index
    %498 = vector.load %arg3[%c0_380, %c3_381, %c2_382, %c0_383] : memref<1x4x8x16xf32, #tpu.memory_space<vmem>>, vector<1x1x6x12xf32>
    %499 = vector.shape_cast %498 : vector<1x1x6x12xf32> to vector<6x12xf32>
    %500 = vector.broadcast %20 : f32 to vector<6x12xf32>
    %501 = arith.mulf %500, %499 : vector<6x12xf32>
    %502 = arith.addf %497, %501 : vector<6x12xf32>
    %c0_384 = arith.constant 0 : index
    %c2_385 = arith.constant 2 : index
    %c2_386 = arith.constant 2 : index
    %c2_387 = arith.constant 2 : index
    %503 = vector.load %arg3[%c0_384, %c2_385, %c2_386, %c2_387] : memref<1x4x8x16xf32, #tpu.memory_space<vmem>>, vector<1x1x6x12xf32>
    %504 = vector.shape_cast %503 : vector<1x1x6x12xf32> to vector<6x12xf32>
    %505 = vector.broadcast %21 : f32 to vector<6x12xf32>
    %506 = arith.mulf %505, %504 : vector<6x12xf32>
    %507 = arith.addf %502, %506 : vector<6x12xf32>
    %c0_388 = arith.constant 0 : index
    %c3_389 = arith.constant 3 : index
    %c2_390 = arith.constant 2 : index
    %c2_391 = arith.constant 2 : index
    %508 = vector.load %arg3[%c0_388, %c3_389, %c2_390, %c2_391] : memref<1x4x8x16xf32, #tpu.memory_space<vmem>>, vector<1x1x6x12xf32>
    %509 = vector.shape_cast %508 : vector<1x1x6x12xf32> to vector<6x12xf32>
    %510 = vector.broadcast %22 : f32 to vector<6x12xf32>
    %511 = arith.mulf %510, %509 : vector<6x12xf32>
    %512 = arith.addf %507, %511 : vector<6x12xf32>
    %c0_392 = arith.constant 0 : index
    %c2_393 = arith.constant 2 : index
    %c2_394 = arith.constant 2 : index
    %c4_395 = arith.constant 4 : index
    %513 = vector.load %arg3[%c0_392, %c2_393, %c2_394, %c4_395] : memref<1x4x8x16xf32, #tpu.memory_space<vmem>>, vector<1x1x6x12xf32>
    %514 = vector.shape_cast %513 : vector<1x1x6x12xf32> to vector<6x12xf32>
    %515 = vector.broadcast %23 : f32 to vector<6x12xf32>
    %516 = arith.mulf %515, %514 : vector<6x12xf32>
    %517 = arith.addf %512, %516 : vector<6x12xf32>
    %c0_396 = arith.constant 0 : index
    %c3_397 = arith.constant 3 : index
    %c2_398 = arith.constant 2 : index
    %c4_399 = arith.constant 4 : index
    %518 = vector.load %arg3[%c0_396, %c3_397, %c2_398, %c4_399] : memref<1x4x8x16xf32, #tpu.memory_space<vmem>>, vector<1x1x6x12xf32>
    %519 = vector.shape_cast %518 : vector<1x1x6x12xf32> to vector<6x12xf32>
    %520 = vector.broadcast %24 : f32 to vector<6x12xf32>
    %521 = arith.mulf %520, %519 : vector<6x12xf32>
    %522 = arith.addf %517, %521 : vector<6x12xf32>
    %523 = arith.maximumf %398, %522 : vector<6x12xf32>
    %c0_400 = arith.constant 0 : index
    %524 = memref.load %arg2[%c0_400] : memref<1xf32, #tpu.memory_space<smem>>
    %525 = vector.broadcast %524 : f32 to vector<6x12xf32>
    %526 = arith.addf %523, %525 : vector<6x12xf32>
    %c0_401 = arith.constant 0 : index
    %c0_402 = arith.constant 0 : index
    %c0_403 = arith.constant 0 : index
    %527 = vector.load %arg4[%c0_401, %c0_402, %c0_403] : memref<1x6x12xf32, #tpu.memory_space<vmem>>, vector<1x6x12xf32>
    %528 = vector.shape_cast %527 : vector<1x6x12xf32> to vector<6x12xf32>
    %529 = vector.shape_cast %526 : vector<6x12xf32> to vector<1x6x12xf32>
    tpu.vector_store %arg4[%c0_401, %c0_402, %c0_403], %529 {strides = array<i32>} : memref<1x6x12xf32, #tpu.memory_space<vmem>>, vector<1x6x12xf32>,
    return
  }
  func.func @transform_0(%arg0: i32) -> i32 {
    %c0_i32 = arith.constant 0 : i32
    %c0_i32_0 = arith.constant 0 : i32
    return %c0_i32 : i32
  }
  func.func @transform_1(%arg0: i32) -> i32 {
    %c0_i32 = arith.constant 0 : i32
    %c0_i32_0 = arith.constant 0 : i32
    return %c0_i32 : i32
  }
  func.func @transform_2(%arg0: i32) -> (i32, i32, i32, i32) {
    %c0_i32 = arith.constant 0 : i32
    %c0_i32_0 = arith.constant 0 : i32
    %c0_i32_1 = arith.constant 0 : i32
    %c0_i32_2 = arith.constant 0 : i32
    return %arg0, %c0_i32, %c0_i32_0, %c0_i32_1 : i32, i32, i32, i32
  }
  func.func @transform_3(%arg0: i32) -> (i32, i32, i32) {
    %c0_i32 = arith.constant 0 : i32
    %c0_i32_0 = arith.constant 0 : i32
    %c0_i32_1 = arith.constant 0 : i32
    return %arg0, %c0_i32, %c0_i32_0 : i32, i32, i32
  }
}

</mosaic_0001>

<bundles_post_ra>
// kernel: tpu_custom_call.1
= control target key start
LH: loop header
LB: loop body
LE: loop exit
PB: predicated region body
PF: predicated region fallthrough
CT: control target
= control target key end

     0   :  { %9 = vsyncpa [#allocation5], 0  ;;  %s1075_s0 = inlined_call_operand.vmem [shape: f32[25], index: 0, kind: input, shape index: {}]   ;;  %s1076_s1 = inlined_call_operand.<no memory space> [shape: f32[1], index: 1, kind: input, shape index: {}]   ;;  %s1077_s2 = inlined_call_operand.hbm [shape: f32[1,4,8,16], index: 2, kind: input, shape index: {}]   ;;  %s1078_s3 = inlined_call_operand.vmem [shape: f32[1,6,12], index: 3, kind: output, shape index: {}]  }
   0x1   :  { %s17_s14 = sshll.u32 %s1075_s0, 4  ;;  %s18_s14 = int_to_ptr.vmem [resolvable:$true] %s17_s14 }
   0x2   :  { %10 = vsyncpa [#allocation4], 0  ;;  %s627_s15 = scalar_lea.vmem %s18_s14, 16  ;;  %p632_p1 = scmp.lt.s32.totalorder %s18_s14, %s18_s14 }
   0x3   :  { %p628_p0 = scmp.ne.s32.totalorder %s18_s14, %s627_s15  ;;  %p633_p2 = scmp.lt.s32.totalorder %s627_s15, %s627_s15 }
   0x5   :  { %p634_p3 = por %p633_p2, %p632_p1 }
   0x7   :  { %p635_p4 = pnand %p634_p3, %p628_p0 }
   0x9   :  { %638 = shalt.err (!%p635_p4)
}
   0xa   :  { %s663_s16 = smov [#allocation3]   ;;  %s664_s17 = smov [#allocation6]  }
   0xb   :  { %20 = dma.vmem_to_smem %s18_s14, 16, %s663_s16, [#allocation5]  }
   0xc   :  { %s28_s18 = sshll.u32 %s664_s17, 4  ;;  %s29_s18 = int_to_ptr.vmem [resolvable:$true] %s28_s18 }
   0xd   :  { %s647_s19 = scalar_lea.vmem %s29_s18, 512  ;;  %p652_p6 = scmp.lt.s32.totalorder %s29_s18, %s29_s18 }
   0xe   :  { %p648_p5 = scmp.ne.s32.totalorder %s29_s18, %s647_s19  ;;  %p653_p7 = scmp.lt.s32.totalorder %s647_s19, %s647_s19 }
  0x10   :  { %p654_p8 = por %p653_p7, %p652_p6 }
  0x12   :  { %p655_p9 = pnand %p654_p8, %p648_p5 }
  0x14   :  { %658 = shalt.err (!%p655_p9)
}
  0x15   :  { %s665_s0 = smov 128   ;;  %s666_s20 = smov 8  }
  0x16   :  { %34 = dma.hbm_to_vmem [thread:$0]  %s1077_s2, 512, %s29_s18, [#allocation4], %s665_s0, %s665_s0, %s666_s20  }
  0x17   :  { %659 = dma.done.wait [#allocation5], 16  }
  0x18   :  { %660 = vsyncadd [#allocation5], 4294967280 }
  0x19   :  { %661 = dma.done.wait [#allocation4], 512  }
  0x1a   :  { %662 = vsyncadd [#allocation4], 4294966784 }
  0x1b   :  { %41 = sfence }
  0x1c   :  { %s600_s23 = sld [smem:[#allocation3 + $0x4]]  ;;  %v695_v0 = vld [vmem:[#allocation6] sm:$0x3f]  ;;  %v699_v2 = vld [vmem:[#allocation6 + $0x10] sm:$0x3f]  ;;  %s667_s30 = smov 124  }
  0x1d   :  { %s598_s24 = sld [smem:[#allocation3 + $0x2]]  ;;  %v705_v5 = vld [vmem:[#allocation6 + $0x8] sm:$0x3f]  ;;  %s668_s5 = smov 126   ;;  %v721_v12 = vld [vmem:[#allocation6 + $0x18] sm:$0x3f] }
  0x1e   :  { %s603_s25 = sld [smem:[#allocation3 + $0x7]]  ;;  %v731_v16 = vld [vmem:[#allocation6 + $0x9] sm:$0x3f]  ;;  %v735_v18 = vld [vmem:[#allocation6 + $0x1] sm:$0x3f]  ;;  %vm589_vm0 = vcmask 95232  }
  0x1f   :  { %s599_s26 = sld [smem:[#allocation3 + $0x3]]  ;;  %v742_v22 = vld [vmem:[#allocation6 + $0x19] sm:$0x3f]  ;;  %v752_v25 = vld [vmem:[#allocation6 + $0x11] sm:$0x3f] }
  0x20   :  { %s605_s27 = sld [smem:[#allocation3 + $0x9]]  ;;  %v783_v36 = vld [vmem:[#allocation6 + $0x2] sm:$0x3f] }
  0x21   :  { %s604_s28 = sld [smem:[#allocation3 + $0x8]] }
  0x22   :  { %v697_v1 = vstv %s600_s23  ;;  %s609_s29 = sld [smem:[#allocation3 + $0xd]] }
  0x23   :  { %v90_v3 = vmul.f32 %v697_v1, %v695_v0  ;;  %v703_v4 = vstv %s598_s24  ;;  %s608_s2 = sld [smem:[#allocation3 + $0xc]] }
  0x24   :  { %v76_v6 = vmul.f32 %v703_v4, %v695_v0  ;;  %v709_v7 = vstv %s603_s25  ;;  %s610_s4 = sld [smem:[#allocation3 + $0xe]]  ;;  %v221_v61 = vmul.f32 %v703_v4, %v705_v5 }
  0x25   :  { %92 = vrot.lane.b32.xlu1 %v90_v3, %s667_s30  ;;  %v107_v8 = vmul.f32 %v709_v7, %v699_v2  ;;  %v714_v9 = vstv %s599_s26  ;;  %s613_s6 = sld [smem:[#allocation3 + $0x11]] }
  0x26   :  { %78 = vrot.lane.b32.xlu0 %v76_v6, %s668_s5  ;;  %v83_v10 = vmul.f32 %v714_v9, %v705_v5  ;;  %v719_v11 = vstv %s605_s27  ;;  %s614_s7 = sld [smem:[#allocation3 + $0x12]]  ;;  %v227_v58 = vmul.f32 %v714_v9, %v695_v0  ;;  %v353_v6 = vmul.f32 %v721_v12, %v714_v9 }
  0x27   :  { %v723_v13 = vstv %s604_s28  ;;  %v121_v14 = vmul.f32 %v719_v11, %v699_v2  ;;  %s615_s8 = sld [smem:[#allocation3 + $0x13]] }
  0x28   :  { %v114_v15 = vmul.f32 %v723_v13, %v721_v12  ;;  %v733_v17 = vstv %s609_s29  ;;  %s597_s9 = sld [smem:[#allocation3 + $0x1]] }
  0x29   :  { %109 = vrot.lane.b32.xlu1 %v107_v8, %s668_s5  ;;  %v737_v19 = vstv %s608_s2  ;;  %v143_v21 = vmul.f32 %v733_v17, %v731_v16  ;;  %s744_s10 = sld [smem:[#allocation3 + $0x16]]  ;;  %v765_v29 = vmul.f32 %v752_v25, %v733_v17  ;;  %v233_v8 = vmul.f32 %v697_v1, %v705_v5 }
  0x2a   :  { %85 = vrot.lane.b32.xlu0 %v83_v10, %s668_s5  ;;  %v149_v20 = vstv %s610_s4  ;;  %v136_v24 = vmul.f32 %v737_v19, %v735_v18  ;;  %v758_v27 = vmul.f32 %v742_v22, %v737_v19  ;;  %s42_s11 = sld [smem:[#allocation3]]  ;;  %v359_v10 = vmul.f32 %v699_v2, %v697_v1 }
  0x2b   :  { %v747_v23 = vmul.f32 %v149_v20, %v731_v16  ;;  %v754_v26 = vstv %s613_s6  ;;  %s602_s12 = sld [smem:[#allocation3 + $0x6]]  ;;  %v761_v28 = vmul.f32 %v752_v25, %v149_v20  ;;  %v768_v30 = vmul.f32 %v742_v22, %v149_v20 }
  0x2c   :  { %s607_s13 = sld [smem:[#allocation3 + $0xb]]  ;;  %v165_v31 = vmul.f32 %v754_v26, %v752_v25  ;;  %v773_v32 = vstv %s614_s7  ;;  %v777_v33 = vmul.f32 %v754_v26, %v742_v22  ;;  %v150_v34 = vmul.f32 %v149_v20, %v735_v18 }
  0x2d   :  { %123 = vrot.lane.b32.xlu1 %v121_v14, %s667_s30  ;;  %v781_v35 = vstv %s615_s8  ;;  %s612_s14 = sld [smem:[#allocation3 + $0x10]]  ;;  %v787_v37 = vmul.f32 %v773_v32, %v752_v25  ;;  %v791_v38 = vmul.f32 %v783_v36, %v754_v26  ;;  %v803_v42 = vmul.f32 %v783_v36, %v773_v32 }
  0x2e   :  { %116 = vrot.lane.b32.xlu0 %v114_v15, %s668_s5  ;;  %v795_v39 = vmul.f32 %v781_v35, %v742_v22  ;;  %v72_v40 = vstv %s597_s9  ;;  %v799_v41 = vmul.f32 %v783_v36, %v781_v35  ;;  %v179_v43 = vmul.f32 %v781_v35, %v752_v25  ;;  %s617_s15 = sld [smem:[#allocation3 + $0x15]] }
  0x2f   :  { %v73_v45 = vmul.f32 %v72_v40, %v705_v5  ;;  %v172_v46 = vmul.f32 %v773_v32, %v742_v22  ;;  %v817_v48 = vstv %s744_s10  ;;  %v215_v53 = vmul.f32 %v72_v40, %v695_v0  ;;  %s619_s16 = sld [smem:[#allocation3 + $0x17]] }
  0x30   :  { %v808_v44 = vstv %s42_s11  ;;  %v194_v55 = vmul.f32 %v817_v48, %v783_v36  ;;  %v345_v60 = vmul.f32 %v721_v12, %v72_v40  ;;  %v457_v63 = vmul.f32 %v699_v2, %v72_v40  ;;  %s601_s17 = sld [smem:[#allocation3 + $0x5]] }
  0x31   :  { %145 = vrot.lane.b32.xlu1 %v143_v21, %s668_s5  ;;  %v69_v47 = vmul.f32 %v808_v44, %v695_v0  ;;  %v103_v49 = vstv %s602_s12  ;;  %v344_v59 = vmul.f32 %v699_v2, %v808_v44  ;;  %v347_v0 = vmul.f32 %v699_v2, %v703_v4  ;;  %s620_s18 = sld [smem:[#allocation3 + $0x18]] }
  0x32   :  { %138 = vrot.lane.b32.xlu0 %v136_v24, %s668_s5  ;;  %v819_v50 = vstv %s607_s13  ;;  %v824_v52 = vmul.f32 %v103_v49, %v721_v12  ;;  %v858_v3 = vmul.f32 %v731_v16, %v103_v49  ;;  %v463_v14 = vmul.f32 %v721_v12, %v703_v4  ;;  %s606_s19 = sld [smem:[#allocation3 + $0xa]] }
  0x33   :  { %v821_v51 = vadd.f32 %v73_v45, %v69_v47  ;;  %v830_v54 = vmul.f32 %v819_v50, %v731_v16  ;;  %v835_v56 = vstv %s612_s14  ;;  %v850_v62 = vadd.f32 %v345_v60, %v344_v59  ;;  %s611_s0 = sld [smem:[#allocation3 + $0xf]] }
  0x34   :  { %v839_v57 = vmul.f32 %v835_v56, %v742_v22  ;;  %v241_v15 = vmul.f32 %v103_v49, %v699_v2  ;;  %v469_v20 = vmul.f32 %v699_v2, %v714_v9  ;;  %v247_v21 = vmul.f32 %v709_v7, %v721_v12  ;;  %s616_s20 = sld [smem:[#allocation3 + $0x14]] }
  0x35   :  { %167 = vrot.lane.b32.xlu1 %v165_v31, %s668_s5  ;;  %v475_v24 = vmul.f32 %v721_v12, %v697_v1  ;;  %v369_v4 = vmul.f32 %v735_v18, %v709_v7  ;;  %v253_v9 = vmul.f32 %v723_v13, %v699_v2  ;;  %v259_v31 = vmul.f32 %v719_v11, %v721_v12 }
  0x36   :  { %152 = vrot.lane.b32.xlu0 %v150_v34, %s667_s30  ;;  %v483_v34 = vmul.f32 %v735_v18, %v103_v49  ;;  %v896_v1 = vmul.f32 %v742_v22, %v819_v50  ;;  %v489_v40 = vmul.f32 %v731_v16, %v709_v7  ;;  %v495_v45 = vmul.f32 %v735_v18, %v723_v13 }
  0x37   :  { %v501_v7 = vmul.f32 %v731_v16, %v719_v11  ;;  %v267_v47 = vmul.f32 %v819_v50, %v735_v18  ;;  %v273_v49 = vmul.f32 %v737_v19, %v731_v16  ;;  %v207_v59 = vstv %s620_s18 }
  0x39   :  { %181 = vrot.lane.b32.xlu1 %v179_v43, %s667_s30  ;;  %v375_v43 = vmul.f32 %v731_v16, %v723_v13  ;;  %v279_v13 = vmul.f32 %v733_v17, %v735_v18 }
  0x3a   :  { %174 = vrot.lane.b32.xlu0 %v172_v46, %s668_s5  ;;  %v381_v46 = vmul.f32 %v735_v18, %v719_v11  ;;  %v509_v11 = vmul.f32 %v752_v25, %v819_v50  ;;  %v293_v50 = vmul.f32 %v835_v56, %v752_v25 }
  0x3d   :  { %217 = vrot.lane.b32.xlu1 %v215_v53, %s668_s5  ;;  %v391_v53 = vmul.f32 %v752_v25, %v737_v19  ;;  %v954_v19 = vld [vmem:[#allocation6 + $0xa] sm:$0x3f] }
  0x3e   :  { %196 = vrot.lane.b32.xlu0 %v194_v55, %s668_s5  ;;  %v397_v55 = vmul.f32 %v742_v22, %v733_v17  ;;  %v535_v17 = vmul.f32 %v783_v36, %v835_v56 }
  0x41   :  { %229 = vrot.lane.b32.xlu1 %v227_v58, %s667_s30 }
  0x42   :  { %223 = vrot.lane.b32.xlu0 %v221_v61, %s668_s5 }
  0x45   :  { %459 = vrot.lane.b32.xlu1 %v457_v63, %s668_s5 }
  0x46   :  { %349 = vrot.lane.b32.xlu0 %v347_v0, %s668_s5 }
  0x49   :  { %355 = vrot.lane.b32.xlu1 %v353_v6, %s668_s5 }
  0x4a   :  { %235 = vrot.lane.b32.xlu0 %v233_v8, %s667_s30  ;;  %v997_v8 = vld [vmem:[#allocation6 + $0x1a] sm:$0x3f] }
  0x4d   :  { %361 = vrot.lane.b32.xlu1 %v359_v10, %s667_s30 }
  0x4e   :  { %465 = vrot.lane.b32.xlu0 %v463_v14, %s668_s5 }
  0x51   :  { %243 = vrot.lane.b32.xlu1 %v241_v15, %s668_s5 }
  0x52   :  { %471 = vrot.lane.b32.xlu0 %v469_v20, %s667_s30 }
  0x55   :  { %249 = vrot.lane.b32.xlu1 %v247_v21, %s668_s5  ;;  %v337_v21 = vmul.f32 %v207_v59, %v954_v19 }
  0x56   :  { %477 = vrot.lane.b32.xlu0 %v475_v24, %s667_s30 }
  0x59   :  { %371 = vrot.lane.b32.xlu1 %v369_v4, %s668_s5 }
  0x5a   :  { %255 = vrot.lane.b32.xlu0 %v253_v9, %s667_s30  ;;  %v1004_v9 = vstv %s606_s19 }
  0x5d   :  { %261 = vrot.lane.b32.xlu1 %v259_v31, %s667_s30 }
  0x5e   :  { %485 = vrot.lane.b32.xlu0 %v483_v34, %s668_s5 }
  0x61   :  { %491 = vrot.lane.b32.xlu1 %v489_v40, %s668_s5 }
  0x62   :  { %377 = vrot.lane.b32.xlu0 %v375_v43, %s668_s5  ;;  %v567_v43 = vmul.f32 %v997_v8, %v817_v48 }
  0x65   :  { %497 = vrot.lane.b32.xlu1 %v495_v45, %s667_s30 }
  0x66   :  { %383 = vrot.lane.b32.xlu0 %v381_v46, %s667_s30  ;;  %v129_v46 = vmul.f32 %v1004_v9, %v735_v18 }
  0x69   :  { %503 = vrot.lane.b32.xlu1 %v501_v7, %s667_s30 }
  0x6a   :  { %269 = vrot.lane.b32.xlu0 %v267_v47, %s668_s5 }
  0x6d   :  { %281 = vrot.lane.b32.xlu1 %v279_v13, %s667_s30  ;;  %v579_v13 = vmul.f32 %v997_v8, %v207_v59 }
  0x6e   :  { %275 = vrot.lane.b32.xlu0 %v273_v49, %s668_s5 }
  0x71   :  { %511 = vrot.lane.b32.xlu1 %v509_v11, %s668_s5 }
  0x72   :  { %393 = vrot.lane.b32.xlu0 %v391_v53, %s668_s5 }
  0x75   :  { %399 = vrot.lane.b32.xlu1 %v397_v55, %s668_s5 }
  0x76   :  { %287 = vrot.lane.b32.xlu0 %v747_v23, %s667_s30  ;;  %v541_v23 = vmul.f32 %v954_v19, %v754_v26 }
  0x79   :  { %405 = vrot.lane.b32.xlu1 %v761_v28, %s667_s30  ;;  %v965_v28 = vstv %s617_s15 }
  0x7a   :  { %517 = vrot.lane.b32.xlu0 %v758_v27, %s668_s5  ;;  %v419_v27 = vmul.f32 %v954_v19, %v773_v32  ;;  %v319_v26 = vmul.f32 %v965_v28, %v783_v36 }
  0x7d   :  { %295 = vrot.lane.b32.xlu1 %v293_v50, %s668_s5  ;;  %v1019_v50 = vstv %s611_s0 }
  0x7e   :  { %523 = vrot.lane.b32.xlu0 %v765_v29, %s667_s30  ;;  %v553_v29 = vmul.f32 %v954_v19, %v781_v35 }
  0x81   :  { %301 = vrot.lane.b32.xlu1 %v777_v33, %s668_s5  ;;  %v325_v33 = vmul.f32 %v817_v48, %v954_v19 }
  0x82   :  { %529 = vrot.lane.b32.xlu0 %v768_v30, %s667_s30  ;;  %v200_v30 = vstv %s619_s16 }
  0x83   :  { %v201_v32 = vmul.f32 %v200_v30, %v954_v19  ;;  %v331_v58 = vmul.f32 %v200_v30, %v783_v36 }
  0x85   :  { %415 = vrot.lane.b32.xlu1 %v791_v38, %s668_s5 }
  0x86   :  { %307 = vrot.lane.b32.xlu0 %v787_v37, %s667_s30  ;;  %v980_v37 = vld [vmem:[#allocation6 + $0x12] sm:$0x3f] }
  0x87   :  { %v561_v6 = vmul.f32 %v980_v37, %v965_v28  ;;  %v449_v40 = vmul.f32 %v980_v37, %v207_v59  ;;  %v573_v49 = vmul.f32 %v980_v37, %v200_v30 }
  0x89   :  { %313 = vrot.lane.b32.xlu1 %v795_v39, %s667_s30 }
  0x8a   :  { %537 = vrot.lane.b32.xlu0 %v535_v17, %s668_s5 }
  0x8d   :  { %543 = vrot.lane.b32.xlu1 %v541_v23, %s668_s5 }
  0x8e   :  { %421 = vrot.lane.b32.xlu0 %v419_v27, %s668_s5  ;;  %v214_v27 = vmul.f32 %v705_v5, %v808_v44 }
  0x91   :  { %549 = vrot.lane.b32.xlu1 %v803_v42, %s667_s30  ;;  %v987_v42 = vstv %s601_s17 }
  0x92   :  { %427 = vrot.lane.b32.xlu0 %v799_v41, %s667_s30  ;;  %v437_v41 = vmul.f32 %v980_v37, %v817_v48  ;;  %v99_v63 = vmul.f32 %v987_v42, %v699_v2  ;;  %v443_v2 = vmul.f32 %v997_v8, %v200_v30 }
  0x95   :  { %555 = vrot.lane.b32.xlu1 %v553_v29, %s667_s30 }
  0x96   :  { %321 = vrot.lane.b32.xlu0 %v319_v26, %s668_s5  ;;  %v158_v26 = vmul.f32 %v1019_v50, %v752_v25 }
  0x97   :  { %v93_v35 = vpop.permute.xlu1 %92 }
  0x98   :  { %v79_v38 = vpop.permute.xlu0 %78 }
  0x99   :  { %v81_v39 = vadd.f32 %v79_v38, %v821_v51  ;;  %203 = vrot.lane.b32.xlu1 %v201_v32, %s668_s5  ;;  %v208_v51 = vmul.f32 %v207_v59, %v783_v36  ;;  %v1027_v59 = vstv %s616_s20 }
  0x9a   :  { %327 = vrot.lane.b32.xlu0 %v325_v33, %s668_s5 }
  0x9b   :  { %v110_v60 = vpop.permute.xlu1 %109 }
  0x9c   :  { %v86_v61 = vpop.permute.xlu0 %85 }
  0x9d   :  { %v88_v0 = vadd.f32 %v86_v61, %v81_v39  ;;  %439 = vrot.lane.b32.xlu1 %v437_v41, %s668_s5 }
  0x9e   :  { %333 = vrot.lane.b32.xlu0 %v331_v58, %s667_s30 }
  0x9f   :  { %v95_v10 = vadd.f32 %v93_v35, %v88_v0  ;;  %v124_v14 = vpop.permute.xlu1 %123 }
  0xa0   :  { %v117_v15 = vpop.permute.xlu0 %116 }
  0xa1   :  { %v100_v20 = vadd.f32 %v99_v63, %v95_v10  ;;  %210 = vrot.lane.b32.xlu1 %v208_v51, %s667_s30  ;;  %v187_v63 = vmul.f32 %v1027_v59, %v783_v36 }
  0xa2   :  { %563 = vrot.lane.b32.xlu0 %v561_v6, %s668_s5  ;;  %v239_v6 = vmul.f32 %v721_v12, %v987_v42 }
  0xa3   :  { %v105_v24 = vadd.f32 %v824_v52, %v100_v20  ;;  %v146_v4 = vpop.permute.xlu1 %145 }
  0xa4   :  { %v139_v31 = vpop.permute.xlu0 %138 }
  0xa5   :  { %v112_v34 = vadd.f32 %v110_v60, %v105_v24  ;;  %445 = vrot.lane.b32.xlu1 %v443_v2, %s668_s5 }
  0xa6   :  { %339 = vrot.lane.b32.xlu0 %v337_v21, %s667_s30  ;;  %v365_v21 = vmul.f32 %v735_v18, %v987_v42 }
  0xa7   :  { %v119_v45 = vadd.f32 %v117_v15, %v112_v34  ;;  %v168_v52 = vpop.permute.xlu1 %167 }
  0xa8   :  { %v153_v7 = vpop.permute.xlu0 %152 }
  0xa9   :  { %v126_v47 = vadd.f32 %v124_v14, %v119_v45  ;;  %451 = vrot.lane.b32.xlu1 %v449_v40, %s667_s30 }
  0xaa   :  { %569 = vrot.lane.b32.xlu0 %v567_v43, %s668_s5 }
  0xab   :  { %v130_v11 = vadd.f32 %v129_v46, %v126_v47  ;;  %v182_v53 = vpop.permute.xlu1 %181 }
  0xac   :  { %v175_v55 = vpop.permute.xlu0 %174 }
  0xad   :  { %v134_v48 = vadd.f32 %v830_v54, %v130_v11  ;;  %581 = vrot.lane.b32.xlu1 %v579_v13, %s667_s30 }
  0xae   :  { %575 = vrot.lane.b32.xlu0 %v573_v49, %s667_s30 }
  0xaf   :  { %v141_v17 = vadd.f32 %v139_v31, %v134_v48  ;;  %v218_v23 = vpop.permute.xlu1 %217 }
  0xb0   :  { %v197_v29 = vpop.permute.xlu0 %196  ;;  %v220_v33 = vadd.f32 %v218_v23, %v214_v27 }
  0xb1   :  { %v148_v30 = vadd.f32 %v146_v4, %v141_v17  ;;  %v456_v4 = vmul.f32 %v721_v12, %v808_v44 }
  0xb3   :  { %v155_v32 = vadd.f32 %v153_v7, %v148_v30  ;;  %v230_v54 = vpop.permute.xlu1 %229 }
  0xb4   :  { %v224_v35 = vpop.permute.xlu0 %223 }
  0xb5   :  { %v159_v38 = vadd.f32 %v158_v26, %v155_v32  ;;  %v226_v41 = vadd.f32 %v224_v35, %v220_v33  ;;  %v265_v26 = vmul.f32 %v731_v16, %v1004_v9 }
  0xb7   :  { %v163_v39 = vadd.f32 %v839_v57, %v159_v38  ;;  %v460_v58 = vpop.permute.xlu1 %459  ;;  %v232_v0 = vadd.f32 %v230_v54, %v226_v41  ;;  %v191_v57 = vmul.f32 %v965_v28, %v954_v19  ;;  %v387_v41 = vmul.f32 %v752_v25, %v1004_v9 }
  0xb8   :  { %v350_v60 = vpop.permute.xlu0 %349 }
  0xb9   :  { %v170_v61 = vadd.f32 %v168_v52, %v163_v39  ;;  %v352_v10 = vadd.f32 %v350_v60, %v850_v62  ;;  %v462_v52 = vadd.f32 %v460_v58, %v456_v4 }
  0xbb   :  { %v177_v5 = vadd.f32 %v175_v55, %v170_v61  ;;  %v356_v51 = vpop.permute.xlu1 %355 }
  0xbc   :  { %v236_v14 = vpop.permute.xlu0 %235  ;;  %v358_v2 = vadd.f32 %v356_v51, %v352_v10 }
  0xbd   :  { %v184_v15 = vadd.f32 %v182_v53, %v177_v5  ;;  %v238_v20 = vadd.f32 %v236_v14, %v232_v0  ;;  %v481_v53 = vmul.f32 %v731_v16, %v987_v42  ;;  %v507_v16 = vmul.f32 %v742_v22, %v1004_v9 }
  0xbf   :  { %v188_v24 = vadd.f32 %v187_v63, %v184_v15  ;;  %v362_v31 = vpop.permute.xlu1 %361  ;;  %v240_v34 = vadd.f32 %v239_v6, %v238_v20 }
  0xc0   :  { %v466_v40 = vpop.permute.xlu0 %465  ;;  %v364_v43 = vadd.f32 %v362_v31, %v358_v2 }
  0xc1   :  { %v192_v45 = vadd.f32 %v191_v57, %v188_v24  ;;  %v468_v49 = vadd.f32 %v466_v40, %v462_v52 }
  0xc2   :  { %v366_v62 = vadd.f32 %v365_v21, %v364_v43 }
  0xc3   :  { %v1040_v46 = vadd.f32 %v197_v29, %v192_v45  ;;  %v244_v7 = vpop.permute.xlu1 %243 }
  0xc4   :  { %v472_v47 = vpop.permute.xlu0 %471  ;;  %v368_v13 = vadd.f32 %v858_v3, %v366_v62  ;;  %v246_v55 = vadd.f32 %v244_v7, %v240_v34  ;;  %v291_v34 = vmul.f32 %v742_v22, %v1019_v50  ;;  %v409_v62 = vmul.f32 %v783_v36, %v1019_v50 }
  0xc5   :  { %v474_v11 = vadd.f32 %v472_v47, %v468_v49 }
  0xc7   :  { %v250_v18 = vpop.permute.xlu1 %249 }
  0xc8   :  { %v478_v12 = vpop.permute.xlu0 %477  ;;  %v252_v23 = vadd.f32 %v250_v18, %v246_v55 }
  0xc9   :  { %v480_v44 = vadd.f32 %v478_v12, %v474_v11 }
  0xcb   :  { %v372_v48 = vpop.permute.xlu1 %371  ;;  %v482_v17 = vadd.f32 %v481_v53, %v480_v44 }
  0xcc   :  { %v256_v27 = vpop.permute.xlu0 %255  ;;  %v374_v38 = vadd.f32 %v372_v48, %v368_v13  ;;  %v411_v13 = vmul.f32 %v954_v19, %v835_v56 }
  0xcd   :  { %v258_v29 = vadd.f32 %v256_v27, %v252_v23 }
  0xcf   :  { %v262_v30 = vpop.permute.xlu1 %261 }
  0xd0   :  { %v486_v32 = vpop.permute.xlu0 %485  ;;  %v264_v3 = vadd.f32 %v262_v30, %v258_v29 }
  0xd1   :  { %v488_v39 = vadd.f32 %v486_v32, %v482_v17 }
  0xd2   :  { %v266_v33 = vadd.f32 %v265_v26, %v264_v3 }
  0xd3   :  { %v492_v54 = vpop.permute.xlu1 %491 }
  0xd4   :  { %v378_v35 = vpop.permute.xlu0 %377  ;;  %v494_v60 = vadd.f32 %v492_v54, %v488_v39 }
  0xd5   :  { %v380_v42 = vadd.f32 %v378_v35, %v374_v38 }
  0xd7   :  { %v498_v58 = vpop.permute.xlu1 %497 }
  0xd8   :  { %v384_v61 = vpop.permute.xlu0 %383  ;;  %v500_v63 = vadd.f32 %v498_v58, %v494_v60 }
  0xd9   :  { %v386_v5 = vadd.f32 %v384_v61, %v380_v42  ;;  %v533_v42 = vmul.f32 %v954_v19, %v1019_v50  ;;  %v435_v50 = vmul.f32 %v997_v8, %v965_v28 }
  0xdb   :  { %v388_v0 = vadd.f32 %v387_v41, %v386_v5  ;;  %v504_v51 = vpop.permute.xlu1 %503  ;;  %v317_v5 = vmul.f32 %v954_v19, %v1027_v59 }
  0xdc   :  { %v270_v6 = vpop.permute.xlu0 %269  ;;  %v506_v10 = vadd.f32 %v504_v51, %v500_v63  ;;  %v432_v63 = vmul.f32 %v980_v37, %v1027_v59 }
  0xdd   :  { %v390_v14 = vadd.f32 %v896_v1, %v388_v0  ;;  %v272_v2 = vadd.f32 %v270_v6, %v266_v33 }
  0xde   :  { %v508_v15 = vadd.f32 %v507_v16, %v506_v10 }
  0xdf   :  { %v282_v57 = vpop.permute.xlu1 %281 }
  0xe0   :  { %v276_v20 = vpop.permute.xlu0 %275 }
  0xe1   :  { %v278_v21 = vadd.f32 %v276_v20, %v272_v2 }
  0xe3   :  { %v512_v25 = vpop.permute.xlu1 %511  ;;  %v284_v4 = vadd.f32 %v282_v57, %v278_v21 }
  0xe4   :  { %v394_v24 = vpop.permute.xlu0 %393  ;;  %v514_v26 = vadd.f32 %v512_v25, %v508_v15 }
  0xe5   :  { %v396_v40 = vadd.f32 %v394_v24, %v390_v14 }
  0xe7   :  { %v400_v31 = vpop.permute.xlu1 %399 }
  0xe8   :  { %v288_v9 = vpop.permute.xlu0 %287  ;;  %v402_v45 = vadd.f32 %v400_v31, %v396_v40 }
  0xe9   :  { %v290_v43 = vadd.f32 %v288_v9, %v284_v4 }
  0xeb   :  { %v406_v1 = vpop.permute.xlu1 %405  ;;  %v292_v52 = vadd.f32 %v291_v34, %v290_v43  ;;  %v559_v34 = vmul.f32 %v997_v8, %v1027_v59  ;;  %v587_v8 = vstv %s1076_s1 }
  0xec   :  { %v518_v7 = vpop.permute.xlu0 %517  ;;  %v408_v47 = vadd.f32 %v406_v1, %v402_v45 }
  0xed   :  { %v520_v30 = vadd.f32 %v518_v7, %v514_v26 }
  0xee   :  { %v410_v49 = vadd.f32 %v409_v62, %v408_v47 }
  0xef   :  { %v296_v11 = vpop.permute.xlu1 %295 }
  0xf0   :  { %v524_v18 = vpop.permute.xlu0 %523  ;;  %v412_v53 = vadd.f32 %v411_v13, %v410_v49  ;;  %v298_v32 = vadd.f32 %v296_v11, %v292_v52 }
  0xf1   :  { %v526_v56 = vadd.f32 %v524_v18, %v520_v30 }
  0xf3   :  { %v302_v12 = vpop.permute.xlu1 %301 }
  0xf4   :  { %v530_v22 = vpop.permute.xlu0 %529  ;;  %v304_v54 = vadd.f32 %v302_v12, %v298_v32 }
  0xf5   :  { %v532_v38 = vadd.f32 %v530_v22, %v526_v56 }
  0xf7   :  { %v416_v44 = vpop.permute.xlu1 %415  ;;  %v534_v0 = vadd.f32 %v533_v42, %v532_v38 }
  0xf8   :  { %v308_v55 = vpop.permute.xlu0 %307  ;;  %v418_v35 = vadd.f32 %v416_v44, %v412_v53 }
  0xf9   :  { %v310_v39 = vadd.f32 %v308_v55, %v304_v54 }
  0xfb   :  { %v314_v48 = vpop.permute.xlu1 %313 }
  0xfc   :  { %v538_v17 = vpop.permute.xlu0 %537  ;;  %v316_v61 = vadd.f32 %v314_v48, %v310_v39 }
  0xfd   :  { %v540_v10 = vadd.f32 %v538_v17, %v534_v0 }
  0xfe   :  { %v318_v14 = vadd.f32 %v317_v5, %v316_v61 }
  0xff   :  { %v544_v23 = vpop.permute.xlu1 %543 }
 0x100   :  { %v422_v27 = vpop.permute.xlu0 %421  ;;  %v546_v57 = vadd.f32 %v544_v23, %v540_v10 }
 0x101   :  { %v424_v58 = vadd.f32 %v422_v27, %v418_v35 }
 0x103   :  { %v550_v36 = vpop.permute.xlu1 %549 }
 0x104   :  { %v428_v29 = vpop.permute.xlu0 %427  ;;  %v552_v25 = vadd.f32 %v550_v36, %v546_v57 }
 0x105   :  { %v430_v16 = vadd.f32 %v428_v29, %v424_v58 }
 0x107   :  { %v556_v3 = vpop.permute.xlu1 %555  ;;  %v433_v15 = vadd.f32 %v432_v63, %v430_v16 }
 0x108   :  { %v322_v33 = vpop.permute.xlu0 %321  ;;  %v558_v4 = vadd.f32 %v556_v3, %v552_v25 }
 0x109   :  { %v324_v20 = vadd.f32 %v322_v33, %v318_v14  ;;  %v436_v19 = vadd.f32 %v435_v50, %v433_v15 }
 0x10a   :  { %v560_v1 = vadd.f32 %v559_v34, %v558_v4 }
 0x10b   :  { %v204_v41 = vpop.permute.xlu1 %203 }
 0x10c   :  { %v328_v60 = vpop.permute.xlu0 %327  ;;  %v206_v37 = vadd.f32 %v204_v41, %v1040_v46 }
 0x10d   :  { %v330_v24 = vadd.f32 %v328_v60, %v324_v20 }
 0x10f   :  { %v440_v51 = vpop.permute.xlu1 %439 }
 0x110   :  { %v334_v6 = vpop.permute.xlu0 %333  ;;  %v442_v9 = vadd.f32 %v440_v51, %v436_v19 }
 0x111   :  { %v336_v31 = vadd.f32 %v334_v6, %v330_v24 }
 0x113   :  { %v211_v2 = vpop.permute.xlu1 %210 }
 0x114   :  { %v564_v21 = vpop.permute.xlu0 %563  ;;  %v213_v45 = vadd.f32 %v211_v2, %v206_v37 }
 0x115   :  { %v566_v49 = vadd.f32 %v564_v21, %v560_v1 }
 0x117   :  { %v446_v40 = vpop.permute.xlu1 %445 }
 0x118   :  { %v340_v43 = vpop.permute.xlu0 %339  ;;  %v448_v28 = vadd.f32 %v446_v40, %v442_v9 }
 0x119   :  { %v342_v62 = vadd.f32 %v340_v43, %v336_v31 }
 0x11b   :  { %v343_v52 = vmax.f32 %v213_v45, %v342_v62  ;;  %v452_v7 = vpop.permute.xlu1 %451 }
 0x11c   :  { %v570_v47 = vpop.permute.xlu0 %569  ;;  %v454_v13 = vadd.f32 %v452_v7, %v448_v28 }
 0x11d   :  { %v572_v18 = vadd.f32 %v570_v47, %v566_v49 }
 0x11e   :  { %v455_v11 = vmax.f32 %v343_v52, %v454_v13 }
 0x11f   :  { %v582_v46 = vpop.permute.xlu1 %581 }
 0x120   :  { %v576_v53 = vpop.permute.xlu0 %575 }
 0x121   :  { %v578_v12 = vadd.f32 %v576_v53, %v572_v18 }
 0x123   :  { %v584_v22 = vadd.f32 %v582_v46, %v578_v12 }
 0x125   :  { %v585_v59 = vmax.f32 %v455_v11, %v584_v22 }
 0x127   :  { %v588_v44 = vadd.f32 %v587_v8, %v585_v59 }
 0x129   :  { %590 = vst.msk [vmem:[%s1078_s3] sm:$0x3f] %vm589_vm0, %v588_v44 }
 0x12a   :  { %595 = vsyncpa [#allocation4], 1 }
 0x12b   :  { %596 = vsyncpa [#allocation5], 1 }

</bundles_post_ra>
